<compile_context>
chip_gen: v7x
topology: tpu7x:2x2x1
jax: 0.10.0
libtpu: 0.0.40
codegen_flags: <defaults>
</compile_context>

<pallas_src>
import functools

import jax
import jax.numpy as jnp
from jax.experimental import pallas as pl
from jax.experimental.pallas import tpu as pltpu

NEG_SLOPE = 0.01                 # nn.LeakyReLU() default
_TM_MAX = 512                    # M tile cap (multiple of 16)
_TN_MAX = 512                    # Cout tile cap
_TK_MAX = 2048                   # K tile cap (full K fits for most layers)
_SMALL_M = 32                    # below this, skip Pallas -> einsum path
_VMEM_LIMIT = 40 * 1024 * 1024   # explicit scoped-VMEM limit (v7x-safe)


def _cdiv(a, b):
    return -(-a // b)


def _round_up(x, m):
    return _cdiv(x, m) * m


def _k_tiling(k):
    """Return (kpad, tk, gk) with tk * gk == kpad >= k.

    Single full-K tile (no padding) when k <= _TK_MAX, else lane-aligned
    (128-multiple) tiles with minimal padding.
    """
    if k <= _TK_MAX:
        return k, k, 1
    gk = _cdiv(k, _TK_MAX)
    tk = _round_up(_cdiv(k, gk), 128)
    return tk * gk, tk, gk


# ---------------------------------------------------------------------------
# Pallas kernel: grouped, tiled GEMM (bf16 x bf16 -> f32 acc) + bias + LeakyReLU
# grid = (G, M_tiles, N_tiles, K_tiles), reduction axis (K) innermost.
# ---------------------------------------------------------------------------
def _gemm_kernel(p_ref, w_ref, b_ref, o_ref, acc_ref, *, apply_act):
    @pl.when(pl.program_id(3) == 0)
    def _():
        acc_ref[...] = jnp.zeros_like(acc_ref)

    acc_ref[...] += jnp.dot(p_ref[...], w_ref[...],
                            preferred_element_type=jnp.float32)

    @pl.when(pl.program_id(3) == pl.num_programs(3) - 1)
    def _():
        r = acc_ref[...] + b_ref[...]          # (1, TN) f32 broadcast over rows
        if apply_act:
            r = jnp.where(r >= 0.0, r, NEG_SLOPE * r)
        o_ref[...] = r.astype(o_ref.dtype)


def _choose_tiles(G, M, Kp, Cout, tk):
    """Tile/grid selection; guarantees legal (8,128)-aligned or full blocks."""
    tm = min(_TM_MAX, _round_up(M, 16))        # 16-row multiple (bf16 packing)
    gm = _cdiv(M, tm)
    if Cout > _TN_MAX and Cout % _TN_MAX == 0:
        tn = _TN_MAX
    else:
        tn = Cout                              # full Cout block (always legal)
    gn = Cout // tn
    gk = Kp // tk

    # v7x has 2 TensorCores: keep >= 2 programs on the parallel grid axes so
    # neither core idles.  Split the larger operand's axis so the smaller one
    # is the one re-streamed.  (No-op on v5e/v6e.)
    if G * gm * gn < 2:
        lhs_bytes, w_bytes = M * Kp * 2, Kp * Cout * 2
        if M >= 32 and (lhs_bytes >= w_bytes or Cout % 256 != 0):
            tm = _round_up(_cdiv(M, 2), 16)    # split M (re-streams weights)
            gm = _cdiv(M, tm)
        elif Cout % 256 == 0:
            tn, gn = Cout // 2, 2              # split N (re-streams patches)
    return tm, gm, tn, gn, gk


def _gemm_bias_act(patches, w, b, tk, apply_act, out_dtype):
    """patches: (G, M, Kp) bf16, w: (G, Kp, Cout) bf16, b: (G, 1, Cout) f32.

    Returns (G, M, Cout) in out_dtype.
    """
    G, M, Kp = patches.shape
    Cout = w.shape[-1]

    # Tiny layers (late in the stride-2 cascade): launch overhead dominates,
    # let XLA handle the matvec-sized GEMM directly (still bf16 / f32 acc).
    if M < _SMALL_M:
        acc = jnp.einsum("gmk,gkn->gmn", patches, w,
                         preferred_element_type=jnp.float32)
        acc = acc + b
        if apply_act:
            acc = jnp.where(acc >= 0.0, acc, NEG_SLOPE * acc)
        return acc.astype(out_dtype)

    tm, gm, tn, gn, gk = _choose_tiles(G, M, Kp, Cout, tk)

    out_isize = int(jnp.dtype(out_dtype).itemsize)
    cost = pl.CostEstimate(
        flops=2 * G * M * Kp * Cout,
        transcendentals=0,
        bytes_accessed=(G * M * Kp * 2) * gn        # LHS re-streamed per N tile
        + (G * Kp * Cout * 2) * gm                  # weights re-streamed per M tile
        + G * Cout * 4 + G * M * Cout * out_isize)

    out = pl.pallas_call(
        functools.partial(_gemm_kernel, apply_act=apply_act),
        out_shape=jax.ShapeDtypeStruct((G, M, Cout), out_dtype),
        grid_spec=pltpu.PrefetchScalarGridSpec(
            num_scalar_prefetch=0,
            grid=(G, gm, gn, gk),
            in_specs=[
                pl.BlockSpec((None, tm, tk), lambda g, i, j, k: (g, i, k)),
                pl.BlockSpec((None, tk, tn), lambda g, i, j, k: (g, k, j)),
                pl.BlockSpec((None, 1, tn), lambda g, i, j, k: (g, 0, j)),
            ],
            out_specs=pl.BlockSpec((None, tm, tn), lambda g, i, j, k: (g, i, j)),
            scratch_shapes=[pltpu.VMEM((tm, tn), jnp.float32)],
        ),
        compiler_params=pltpu.CompilerParams(
            dimension_semantics=("parallel", "parallel", "parallel", "arbitrary"),
            vmem_limit_bytes=_VMEM_LIMIT),
        cost_estimate=cost,
    )(patches, w, b)
    return out


# ---------------------------------------------------------------------------
# Glue: im2col patch extraction (NHWC), K padded (only if needed) to tk * gk.
# ---------------------------------------------------------------------------
def _im2col(x_nhwc, kh, kw, stride, pad, kpad):
    N, H, W, C = x_nhwc.shape
    xp = jnp.pad(x_nhwc, ((0, 0), (pad, pad), (pad, pad), (0, 0)))
    Ho = (H + 2 * pad - kh) // stride + 1
    Wo = (W + 2 * pad - kw) // stride + 1
    cols = []
    for i in range(kh):
        for j in range(kw):
            cols.append(xp[:, i:i + stride * Ho:stride, j:j + stride * Wo:stride, :])
    K = kh * kw * C
    if kpad > K:  # zero-pad the reduction dim once, inside the single concat
        cols.append(jnp.zeros((N, Ho, Wo, kpad - K), x_nhwc.dtype))
    p = jnp.concatenate(cols, axis=-1)            # (N, Ho, Wo, kpad)
    return p.reshape(N * Ho * Wo, kpad), Ho, Wo


def conv_group(x, prm, stride, pad, G=1, apply_act=True, out_dtype=jnp.bfloat16):
    """Grouped conv: x is (G*N, H, W, C); group g uses prm['w'][g] / prm['b'][g].

    Batch order is group-major, so for G=2 the output equals
    torch.cat((conv_a(x_a), conv_b(x_b)), 0).
    """
    NB, H, W, C = x.shape
    assert NB % G == 0
    kh, kw, kpad, tk = prm["kh"], prm["kw"], prm["kpad"], prm["tk"]
    p, Ho, Wo = _im2col(x, kh, kw, stride, pad, kpad)     # (NB*Ho*Wo, kpad)
    M = (NB // G) * Ho * Wo
    out = _gemm_bias_act(p.reshape(G, M, kpad), prm["w"], prm["b"], tk,
                         apply_act, out_dtype)            # (G, M, Cout)
    Cout = prm["w"].shape[-1]
    return out.reshape(NB, Ho, Wo, Cout)


# ---------------------------------------------------------------------------
# Parameter construction (PyTorch-like OIHW) + one-time GEMM-layout prepare.
# ---------------------------------------------------------------------------
def _make_conv_params(key, c_in, c_out, k):
    kw_, kb_ = jax.random.split(key)
    fan_in = c_in * k * k
    scale = 1.0 / jnp.sqrt(jnp.float32(fan_in))
    w = jax.random.uniform(kw_, (c_out, c_in, k, k), jnp.float32, -scale, scale)
    b = jax.random.uniform(kb_, (c_out,), jnp.float32, -scale, scale)
    return {"w": w, "b": b}


def make_codis_params(key, ch=32, input_dims=(3, 3)):
    keys = jax.random.split(key, 10)
    return {
        "g_conv0_a": _make_conv_params(keys[0], input_dims[0], ch, 5),
        "g_conv0_b": _make_conv_params(keys[1], input_dims[1], ch, 5),
        "g_conv1_a": _make_conv_params(keys[2], ch, ch * 2, 5),
        "g_conv1_b": _make_conv_params(keys[3], ch, ch * 2, 5),
        "g_conv2":   _make_conv_params(keys[4], ch * 2, ch * 4, 5),
        "g_conv3":   _make_conv_params(keys[5], ch * 4, ch * 8, 3),
        "g_conv4":   _make_conv_params(keys[6], ch * 8, ch * 16, 3),
        "g_conv5":   _make_conv_params(keys[7], ch * 16, ch * 32, 3),
        "g_conv6":   _make_conv_params(keys[8], ch * 32, ch * 64, 3),
        "conv7":     _make_conv_params(keys[9], ch * 64, 1, 1),
    }


def prepare_codis_params(raw):
    """One-time: OIHW f32 -> (K, Cout) bf16 GEMM layout, bias f32.

    K is padded only when K > _TK_MAX (and then only to a 128-aligned tile
    multiple).  Twin a/b convs are packed into a single group entry (G=2).
    """
    def prep(*entries):
        shape0 = entries[0]["w"].shape
        for e in entries:
            assert e["w"].shape == shape0, "fused branches must share shapes"
        cout, cin, kh, kw = shape0
        K = kh * kw * cin
        kpad, tk, _ = _k_tiling(K)
        ws, bs = [], []
        for e in entries:
            wm = jnp.transpose(e["w"], (2, 3, 1, 0)).reshape(K, cout)
            if kpad > K:
                wm = jnp.pad(wm, ((0, kpad - K), (0, 0)))
            ws.append(wm.astype(jnp.bfloat16))
            bs.append(e["b"].astype(jnp.float32).reshape(1, cout))
        return {"w": jnp.stack(ws), "b": jnp.stack(bs),
                "kh": kh, "kw": kw, "kpad": kpad, "tk": tk}

    return {
        "conv0": prep(raw["g_conv0_a"], raw["g_conv0_b"]),   # fused G=2
        "conv1": prep(raw["g_conv1_a"], raw["g_conv1_b"]),   # fused G=2
        "conv2": prep(raw["g_conv2"]),
        "conv3": prep(raw["g_conv3"]),
        "conv4": prep(raw["g_conv4"]),
        "conv5": prep(raw["g_conv5"]),
        "conv6": prep(raw["g_conv6"]),
        "conv7": prep(raw["conv7"]),
    }


# ---------------------------------------------------------------------------
# CoDis forward (matches the PyTorch module)
# ---------------------------------------------------------------------------
def codis_forward(prepared, x_a_nchw, x_b_nchw):
    # NCHW (PyTorch) -> NHWC (kernel layout), bf16 activations (f32 accumulate
    # inside every GEMM; final output is f32).
    x_a = jnp.transpose(x_a_nchw, (0, 2, 3, 1)).astype(jnp.bfloat16)
    x_b = jnp.transpose(x_b_nchw, (0, 2, 3, 1)).astype(jnp.bfloat16)
    x = jnp.concatenate((x_a, x_b), axis=0)               # [a-batch ; b-batch]

    h0 = conv_group(x,  prepared["conv0"], 2, 2, G=2)     # conv0_a / conv0_b fused
    h1 = conv_group(h0, prepared["conv1"], 2, 2, G=2)     # == torch.cat((h1_a,h1_b),0)
    h2 = conv_group(h1, prepared["conv2"], 2, 2)
    h3 = conv_group(h2, prepared["conv3"], 2, 1)
    h4 = conv_group(h3, prepared["conv4"], 2, 1)
    h5 = conv_group(h4, prepared["conv5"], 2, 1)
    h6 = conv_group(h5, prepared["conv6"], 2, 1)
    h7 = conv_group(h6, prepared["conv7"], 1, 0, apply_act=False,
                    out_dtype=jnp.float32)                # plain Conv2d, no act
    # PyTorch returns h7.squeeze(); squeeze removes all size-1 dims, so layout
    # (NHWC vs NCHW) does not matter.
    return jnp.squeeze(h7)


if __name__ == "__main__":
    key = jax.random.PRNGKey(0)
    k_par, k_a, k_b = jax.random.split(key, 3)

    # Small shapes consistent with the module: batch=2 per branch, 3 input
    # channels, spatial=32, discriminator width ch=8.
    CH = 8
    raw_params = make_codis_params(k_par, ch=CH, input_dims=(3, 3))
    params = prepare_codis_params(raw_params)             # one-time layout prep

    x_a = jax.random.normal(k_a, (2, 3, 32, 32), jnp.float32)  # NCHW like PyTorch
    x_b = jax.random.normal(k_b, (2, 3, 32, 32), jnp.float32)

    fwd = jax.jit(functools.partial(codis_forward, params))
    out = jax.block_until_ready(fwd(x_a, x_b))

    assert out.shape == (4,), f"unexpected output shape {out.shape}"
    assert bool(jnp.all(jnp.isfinite(out)))
    print("KERNEL_OK")
</pallas_src>

<mosaic_0001>
module attributes {stable_mosaic.version = 11 : i64} {
  func.func @_gemm_kernel(%arg0: i32, %arg1: i32, %arg2: i32, %arg3: i32, %arg4: memref<1x512x75xbf16, #tpu.memory_space<vmem>>, %arg5: memref<1x75x8xbf16, #tpu.memory_space<vmem>>, %arg6: memref<1x1x8xf32, #tpu.memory_space<vmem>>, %arg7: memref<1x512x8xbf16, #tpu.memory_space<vmem>>, %arg8: memref<512x8xf32, #tpu.memory_space<vmem>>) attributes {dimension_semantics = [#tpu.dimension_semantics<parallel>, #tpu.dimension_semantics<parallel>, #tpu.dimension_semantics<parallel>, #tpu.dimension_semantics<arbitrary>], iteration_bounds = array<i64: 2, 1, 1, 1>, scalar_prefetch = 0 : i64, scratch_operands = 1 : i64, tpu.core_type = #tpu.core_type<tc>, window_params = [{transform_indices = @transform_0, window_bounds = array<i64: 1, 512, 75>}, {transform_indices = @transform_1, window_bounds = array<i64: 1, 75, 8>}, {transform_indices = @transform_2, window_bounds = array<i64: 1, 1, 8>}, {transform_indices = @transform_3, window_bounds = array<i64: 1, 512, 8>}]} {
    %c0_i32 = arith.constant 0 : i32
    %0 = arith.cmpi eq, %arg3, %c0_i32 : i32
    %1 = arith.extui %0 : i1 to i32
    %c0_i32_0 = arith.constant 0 : i32
    %2 = arith.cmpi ne, %1, %c0_i32_0 : i32
    scf.if %2 {
      %cst_12 = arith.constant 0.000000e+00 : f32
      %14 = vector.broadcast %cst_12 : f32 to vector<512x8xf32>
      %c0_13 = arith.constant 0 : index
      %c0_14 = arith.constant 0 : index
      %15 = vector.load %arg8[%c0_13, %c0_14] : memref<512x8xf32, #tpu.memory_space<vmem>>, vector<512x8xf32>
      tpu.vector_store %arg8[%c0_13, %c0_14], %14 {strides = array<i32>} : memref<512x8xf32, #tpu.memory_space<vmem>>, vector<512x8xf32>,
    } else {
    }
    %c0 = arith.constant 0 : index
    %c0_1 = arith.constant 0 : index
    %3 = vector.load %arg8[%c0, %c0_1] : memref<512x8xf32, #tpu.memory_space<vmem>>, vector<512x8xf32>
    %c0_2 = arith.constant 0 : index
    %c0_3 = arith.constant 0 : index
    %c0_4 = arith.constant 0 : index
    %4 = vector.load %arg4[%c0_2, %c0_3, %c0_4] : memref<1x512x75xbf16, #tpu.memory_space<vmem>>, vector<1x512x75xbf16>
    %5 = vector.shape_cast %4 : vector<1x512x75xbf16> to vector<512x75xbf16>
    %c0_5 = arith.constant 0 : index
    %c0_6 = arith.constant 0 : index
    %c0_7 = arith.constant 0 : index
    %6 = vector.load %arg5[%c0_5, %c0_6, %c0_7] : memref<1x75x8xbf16, #tpu.memory_space<vmem>>, vector<1x75x8xbf16>
    %7 = vector.shape_cast %6 : vector<1x75x8xbf16> to vector<75x8xbf16>
    %cst = arith.constant dense<0.000000e+00> : vector<512x8xf32>
    %8 = tpu.matmul %5, %7, %cst {dimension_numbers = #tpu.dot_dimension_numbers<[1], [0], [0], [1], [0, 0, 1, 1], [], []>} : vector<512x75xbf16>, vector<75x8xbf16>, vector<512x8xf32> -> vector<512x8xf32>
    %9 = arith.addf %3, %8 : vector<512x8xf32>
    %c0_8 = arith.constant 0 : index
    %c0_9 = arith.constant 0 : index
    %10 = vector.load %arg8[%c0_8, %c0_9] : memref<512x8xf32, #tpu.memory_space<vmem>>, vector<512x8xf32>
    tpu.vector_store %arg8[%c0_8, %c0_9], %9 {strides = array<i32>} : memref<512x8xf32, #tpu.memory_space<vmem>>, vector<512x8xf32>,
    %c0_i32_10 = arith.constant 0 : i32
    %11 = arith.cmpi eq, %arg3, %c0_i32_10 : i32
    %12 = arith.extui %11 : i1 to i32
    %c0_i32_11 = arith.constant 0 : i32
    %13 = arith.cmpi ne, %12, %c0_i32_11 : i32
    scf.if %13 {
      %c0_12 = arith.constant 0 : index
      %c0_13 = arith.constant 0 : index
      %14 = vector.load %arg8[%c0_12, %c0_13] : memref<512x8xf32, #tpu.memory_space<vmem>>, vector<512x8xf32>
      %c0_14 = arith.constant 0 : index
      %c0_15 = arith.constant 0 : index
      %c0_16 = arith.constant 0 : index
      %15 = vector.load %arg6[%c0_14, %c0_15, %c0_16] : memref<1x1x8xf32, #tpu.memory_space<vmem>>, vector<1x1x8xf32>
      %16 = vector.shape_cast %15 : vector<1x1x8xf32> to vector<1x8xf32>
      %17 = vector.broadcast %16 : vector<1x8xf32> to vector<512x8xf32>
      %18 = arith.addf %14, %17 : vector<512x8xf32>
      %cst_17 = arith.constant 0.000000e+00 : f32
      %19 = vector.broadcast %cst_17 : f32 to vector<512x8xf32>
      %20 = arith.cmpf oge, %18, %19 : vector<512x8xf32>
      %cst_18 = arith.constant 0.00999999977 : f32
      %21 = vector.broadcast %cst_18 : f32 to vector<512x8xf32>
      %22 = arith.mulf %21, %18 : vector<512x8xf32>
      %23 = arith.select %20, %18, %22 : vector<512x8xi1>, vector<512x8xf32>
      %24 = arith.truncf %23 : vector<512x8xf32> to vector<512x8xbf16>
      %c0_19 = arith.constant 0 : index
      %c0_20 = arith.constant 0 : index
      %c0_21 = arith.constant 0 : index
      %25 = vector.load %arg7[%c0_19, %c0_20, %c0_21] : memref<1x512x8xbf16, #tpu.memory_space<vmem>>, vector<1x512x8xbf16>
      %26 = vector.shape_cast %25 : vector<1x512x8xbf16> to vector<512x8xbf16>
      %27 = vector.shape_cast %24 : vector<512x8xbf16> to vector<1x512x8xbf16>
      tpu.vector_store %arg7[%c0_19, %c0_20, %c0_21], %27 {strides = array<i32>} : memref<1x512x8xbf16, #tpu.memory_space<vmem>>, vector<1x512x8xbf16>,
    } else {
    }
    return
  }
  func.func @transform_0(%arg0: i32, %arg1: i32, %arg2: i32, %arg3: i32) -> (i32, i32, i32) {
    %c0_i32 = arith.constant 0 : i32
    return %arg0, %arg1, %arg3 : i32, i32, i32
  }
  func.func @transform_1(%arg0: i32, %arg1: i32, %arg2: i32, %arg3: i32) -> (i32, i32, i32) {
    %c0_i32 = arith.constant 0 : i32
    return %arg0, %arg3, %arg2 : i32, i32, i32
  }
  func.func @transform_2(%arg0: i32, %arg1: i32, %arg2: i32, %arg3: i32) -> (i32, i32, i32) {
    %c0_i32 = arith.constant 0 : i32
    %c0_i32_0 = arith.constant 0 : i32
    return %arg0, %c0_i32, %arg2 : i32, i32, i32
  }
  func.func @transform_3(%arg0: i32, %arg1: i32, %arg2: i32, %arg3: i32) -> (i32, i32, i32) {
    %c0_i32 = arith.constant 0 : i32
    return %arg0, %arg1, %arg2 : i32, i32, i32
  }
}

module attributes {stable_mosaic.version = 11 : i64} {
  func.func @_gemm_kernel(%arg0: i32, %arg1: i32, %arg2: i32, %arg3: i32, %arg4: memref<1x128x200xbf16, #tpu.memory_space<vmem>>, %arg5: memref<1x200x16xbf16, #tpu.memory_space<vmem>>, %arg6: memref<1x1x16xf32, #tpu.memory_space<vmem>>, %arg7: memref<1x128x16xbf16, #tpu.memory_space<vmem>>, %arg8: memref<128x16xf32, #tpu.memory_space<vmem>>) attributes {dimension_semantics = [#tpu.dimension_semantics<parallel>, #tpu.dimension_semantics<parallel>, #tpu.dimension_semantics<parallel>, #tpu.dimension_semantics<arbitrary>], iteration_bounds = array<i64: 2, 1, 1, 1>, scalar_prefetch = 0 : i64, scratch_operands = 1 : i64, tpu.core_type = #tpu.core_type<tc>, window_params = [{transform_indices = @transform_0, window_bounds = array<i64: 1, 128, 200>}, {transform_indices = @transform_1, window_bounds = array<i64: 1, 200, 16>}, {transform_indices = @transform_2, window_bounds = array<i64: 1, 1, 16>}, {transform_indices = @transform_3, window_bounds = array<i64: 1, 128, 16>}]} {
    %c0_i32 = arith.constant 0 : i32
    %0 = arith.cmpi eq, %arg3, %c0_i32 : i32
    %1 = arith.extui %0 : i1 to i32
    %c0_i32_0 = arith.constant 0 : i32
    %2 = arith.cmpi ne, %1, %c0_i32_0 : i32
    scf.if %2 {
      %cst_12 = arith.constant 0.000000e+00 : f32
      %14 = vector.broadcast %cst_12 : f32 to vector<128x16xf32>
      %c0_13 = arith.constant 0 : index
      %c0_14 = arith.constant 0 : index
      %15 = vector.load %arg8[%c0_13, %c0_14] : memref<128x16xf32, #tpu.memory_space<vmem>>, vector<128x16xf32>
      tpu.vector_store %arg8[%c0_13, %c0_14], %14 {strides = array<i32>} : memref<128x16xf32, #tpu.memory_space<vmem>>, vector<128x16xf32>,
    } else {
    }
    %c0 = arith.constant 0 : index
    %c0_1 = arith.constant 0 : index
    %3 = vector.load %arg8[%c0, %c0_1] : memref<128x16xf32, #tpu.memory_space<vmem>>, vector<128x16xf32>
    %c0_2 = arith.constant 0 : index
    %c0_3 = arith.constant 0 : index
    %c0_4 = arith.constant 0 : index
    %4 = vector.load %arg4[%c0_2, %c0_3, %c0_4] : memref<1x128x200xbf16, #tpu.memory_space<vmem>>, vector<1x128x200xbf16>
    %5 = vector.shape_cast %4 : vector<1x128x200xbf16> to vector<128x200xbf16>
    %c0_5 = arith.constant 0 : index
    %c0_6 = arith.constant 0 : index
    %c0_7 = arith.constant 0 : index
    %6 = vector.load %arg5[%c0_5, %c0_6, %c0_7] : memref<1x200x16xbf16, #tpu.memory_space<vmem>>, vector<1x200x16xbf16>
    %7 = vector.shape_cast %6 : vector<1x200x16xbf16> to vector<200x16xbf16>
    %cst = arith.constant dense<0.000000e+00> : vector<128x16xf32>
    %8 = tpu.matmul %5, %7, %cst {dimension_numbers = #tpu.dot_dimension_numbers<[1], [0], [0], [1], [0, 0, 1, 1], [], []>} : vector<128x200xbf16>, vector<200x16xbf16>, vector<128x16xf32> -> vector<128x16xf32>
    %9 = arith.addf %3, %8 : vector<128x16xf32>
    %c0_8 = arith.constant 0 : index
    %c0_9 = arith.constant 0 : index
    %10 = vector.load %arg8[%c0_8, %c0_9] : memref<128x16xf32, #tpu.memory_space<vmem>>, vector<128x16xf32>
    tpu.vector_store %arg8[%c0_8, %c0_9], %9 {strides = array<i32>} : memref<128x16xf32, #tpu.memory_space<vmem>>, vector<128x16xf32>,
    %c0_i32_10 = arith.constant 0 : i32
    %11 = arith.cmpi eq, %arg3, %c0_i32_10 : i32
    %12 = arith.extui %11 : i1 to i32
    %c0_i32_11 = arith.constant 0 : i32
    %13 = arith.cmpi ne, %12, %c0_i32_11 : i32
    scf.if %13 {
      %c0_12 = arith.constant 0 : index
      %c0_13 = arith.constant 0 : index
      %14 = vector.load %arg8[%c0_12, %c0_13] : memref<128x16xf32, #tpu.memory_space<vmem>>, vector<128x16xf32>
      %c0_14 = arith.constant 0 : index
      %c0_15 = arith.constant 0 : index
      %c0_16 = arith.constant 0 : index
      %15 = vector.load %arg6[%c0_14, %c0_15, %c0_16] : memref<1x1x16xf32, #tpu.memory_space<vmem>>, vector<1x1x16xf32>
      %16 = vector.shape_cast %15 : vector<1x1x16xf32> to vector<1x16xf32>
      %17 = vector.broadcast %16 : vector<1x16xf32> to vector<128x16xf32>
      %18 = arith.addf %14, %17 : vector<128x16xf32>
      %cst_17 = arith.constant 0.000000e+00 : f32
      %19 = vector.broadcast %cst_17 : f32 to vector<128x16xf32>
      %20 = arith.cmpf oge, %18, %19 : vector<128x16xf32>
      %cst_18 = arith.constant 0.00999999977 : f32
      %21 = vector.broadcast %cst_18 : f32 to vector<128x16xf32>
      %22 = arith.mulf %21, %18 : vector<128x16xf32>
      %23 = arith.select %20, %18, %22 : vector<128x16xi1>, vector<128x16xf32>
      %24 = arith.truncf %23 : vector<128x16xf32> to vector<128x16xbf16>
      %c0_19 = arith.constant 0 : index
      %c0_20 = arith.constant 0 : index
      %c0_21 = arith.constant 0 : index
      %25 = vector.load %arg7[%c0_19, %c0_20, %c0_21] : memref<1x128x16xbf16, #tpu.memory_space<vmem>>, vector<1x128x16xbf16>
      %26 = vector.shape_cast %25 : vector<1x128x16xbf16> to vector<128x16xbf16>
      %27 = vector.shape_cast %24 : vector<128x16xbf16> to vector<1x128x16xbf16>
      tpu.vector_store %arg7[%c0_19, %c0_20, %c0_21], %27 {strides = array<i32>} : memref<1x128x16xbf16, #tpu.memory_space<vmem>>, vector<1x128x16xbf16>,
    } else {
    }
    return
  }
  func.func @transform_0(%arg0: i32, %arg1: i32, %arg2: i32, %arg3: i32) -> (i32, i32, i32) {
    %c0_i32 = arith.constant 0 : i32
    return %arg0, %arg1, %arg3 : i32, i32, i32
  }
  func.func @transform_1(%arg0: i32, %arg1: i32, %arg2: i32, %arg3: i32) -> (i32, i32, i32) {
    %c0_i32 = arith.constant 0 : i32
    return %arg0, %arg3, %arg2 : i32, i32, i32
  }
  func.func @transform_2(%arg0: i32, %arg1: i32, %arg2: i32, %arg3: i32) -> (i32, i32, i32) {
    %c0_i32 = arith.constant 0 : i32
    %c0_i32_0 = arith.constant 0 : i32
    return %arg0, %c0_i32, %arg2 : i32, i32, i32
  }
  func.func @transform_3(%arg0: i32, %arg1: i32, %arg2: i32, %arg3: i32) -> (i32, i32, i32) {
    %c0_i32 = arith.constant 0 : i32
    return %arg0, %arg1, %arg2 : i32, i32, i32
  }
}

module attributes {stable_mosaic.version = 11 : i64} {
  func.func @_gemm_kernel(%arg0: i32, %arg1: i32, %arg2: i32, %arg3: i32, %arg4: memref<1x32x400xbf16, #tpu.memory_space<vmem>>, %arg5: memref<1x400x32xbf16, #tpu.memory_space<vmem>>, %arg6: memref<1x1x32xf32, #tpu.memory_space<vmem>>, %arg7: memref<1x32x32xbf16, #tpu.memory_space<vmem>>, %arg8: memref<32x32xf32, #tpu.memory_space<vmem>>) attributes {dimension_semantics = [#tpu.dimension_semantics<parallel>, #tpu.dimension_semantics<parallel>, #tpu.dimension_semantics<parallel>, #tpu.dimension_semantics<arbitrary>], iteration_bounds = array<i64: 1, 2, 1, 1>, scalar_prefetch = 0 : i64, scratch_operands = 1 : i64, tpu.core_type = #tpu.core_type<tc>, window_params = [{transform_indices = @transform_0, window_bounds = array<i64: 1, 32, 400>}, {transform_indices = @transform_1, window_bounds = array<i64: 1, 400, 32>}, {transform_indices = @transform_2, window_bounds = array<i64: 1, 1, 32>}, {transform_indices = @transform_3, window_bounds = array<i64: 1, 32, 32>}]} {
    %c0_i32 = arith.constant 0 : i32
    %0 = arith.cmpi eq, %arg3, %c0_i32 : i32
    %1 = arith.extui %0 : i1 to i32
    %c0_i32_0 = arith.constant 0 : i32
    %2 = arith.cmpi ne, %1, %c0_i32_0 : i32
    scf.if %2 {
      %cst_12 = arith.constant 0.000000e+00 : f32
      %14 = vector.broadcast %cst_12 : f32 to vector<32x32xf32>
      %c0_13 = arith.constant 0 : index
      %c0_14 = arith.constant 0 : index
      %15 = vector.load %arg8[%c0_13, %c0_14] : memref<32x32xf32, #tpu.memory_space<vmem>>, vector<32x32xf32>
      tpu.vector_store %arg8[%c0_13, %c0_14], %14 {strides = array<i32>} : memref<32x32xf32, #tpu.memory_space<vmem>>, vector<32x32xf32>,
    } else {
    }
    %c0 = arith.constant 0 : index
    %c0_1 = arith.constant 0 : index
    %3 = vector.load %arg8[%c0, %c0_1] : memref<32x32xf32, #tpu.memory_space<vmem>>, vector<32x32xf32>
    %c0_2 = arith.constant 0 : index
    %c0_3 = arith.constant 0 : index
    %c0_4 = arith.constant 0 : index
    %4 = vector.load %arg4[%c0_2, %c0_3, %c0_4] : memref<1x32x400xbf16, #tpu.memory_space<vmem>>, vector<1x32x400xbf16>
    %5 = vector.shape_cast %4 : vector<1x32x400xbf16> to vector<32x400xbf16>
    %c0_5 = arith.constant 0 : index
    %c0_6 = arith.constant 0 : index
    %c0_7 = arith.constant 0 : index
    %6 = vector.load %arg5[%c0_5, %c0_6, %c0_7] : memref<1x400x32xbf16, #tpu.memory_space<vmem>>, vector<1x400x32xbf16>
    %7 = vector.shape_cast %6 : vector<1x400x32xbf16> to vector<400x32xbf16>
    %cst = arith.constant dense<0.000000e+00> : vector<32x32xf32>
    %8 = tpu.matmul %5, %7, %cst {dimension_numbers = #tpu.dot_dimension_numbers<[1], [0], [0], [1], [0, 0, 1, 1], [], []>} : vector<32x400xbf16>, vector<400x32xbf16>, vector<32x32xf32> -> vector<32x32xf32>
    %9 = arith.addf %3, %8 : vector<32x32xf32>
    %c0_8 = arith.constant 0 : index
    %c0_9 = arith.constant 0 : index
    %10 = vector.load %arg8[%c0_8, %c0_9] : memref<32x32xf32, #tpu.memory_space<vmem>>, vector<32x32xf32>
    tpu.vector_store %arg8[%c0_8, %c0_9], %9 {strides = array<i32>} : memref<32x32xf32, #tpu.memory_space<vmem>>, vector<32x32xf32>,
    %c0_i32_10 = arith.constant 0 : i32
    %11 = arith.cmpi eq, %arg3, %c0_i32_10 : i32
    %12 = arith.extui %11 : i1 to i32
    %c0_i32_11 = arith.constant 0 : i32
    %13 = arith.cmpi ne, %12, %c0_i32_11 : i32
    scf.if %13 {
      %c0_12 = arith.constant 0 : index
      %c0_13 = arith.constant 0 : index
      %14 = vector.load %arg8[%c0_12, %c0_13] : memref<32x32xf32, #tpu.memory_space<vmem>>, vector<32x32xf32>
      %c0_14 = arith.constant 0 : index
      %c0_15 = arith.constant 0 : index
      %c0_16 = arith.constant 0 : index
      %15 = vector.load %arg6[%c0_14, %c0_15, %c0_16] : memref<1x1x32xf32, #tpu.memory_space<vmem>>, vector<1x1x32xf32>
      %16 = vector.shape_cast %15 : vector<1x1x32xf32> to vector<1x32xf32>
      %17 = vector.broadcast %16 : vector<1x32xf32> to vector<32x32xf32>
      %18 = arith.addf %14, %17 : vector<32x32xf32>
      %cst_17 = arith.constant 0.000000e+00 : f32
      %19 = vector.broadcast %cst_17 : f32 to vector<32x32xf32>
      %20 = arith.cmpf oge, %18, %19 : vector<32x32xf32>
      %cst_18 = arith.constant 0.00999999977 : f32
      %21 = vector.broadcast %cst_18 : f32 to vector<32x32xf32>
      %22 = arith.mulf %21, %18 : vector<32x32xf32>
      %23 = arith.select %20, %18, %22 : vector<32x32xi1>, vector<32x32xf32>
      %24 = arith.truncf %23 : vector<32x32xf32> to vector<32x32xbf16>
      %c0_19 = arith.constant 0 : index
      %c0_20 = arith.constant 0 : index
      %c0_21 = arith.constant 0 : index
      %25 = vector.load %arg7[%c0_19, %c0_20, %c0_21] : memref<1x32x32xbf16, #tpu.memory_space<vmem>>, vector<1x32x32xbf16>
      %26 = vector.shape_cast %25 : vector<1x32x32xbf16> to vector<32x32xbf16>
      %27 = vector.shape_cast %24 : vector<32x32xbf16> to vector<1x32x32xbf16>
      tpu.vector_store %arg7[%c0_19, %c0_20, %c0_21], %27 {strides = array<i32>} : memref<1x32x32xbf16, #tpu.memory_space<vmem>>, vector<1x32x32xbf16>,
    } else {
    }
    return
  }
  func.func @transform_0(%arg0: i32, %arg1: i32, %arg2: i32, %arg3: i32) -> (i32, i32, i32) {
    %c0_i32 = arith.constant 0 : i32
    return %arg0, %arg1, %arg3 : i32, i32, i32
  }
  func.func @transform_1(%arg0: i32, %arg1: i32, %arg2: i32, %arg3: i32) -> (i32, i32, i32) {
    %c0_i32 = arith.constant 0 : i32
    return %arg0, %arg3, %arg2 : i32, i32, i32
  }
  func.func @transform_2(%arg0: i32, %arg1: i32, %arg2: i32, %arg3: i32) -> (i32, i32, i32) {
    %c0_i32 = arith.constant 0 : i32
    %c0_i32_0 = arith.constant 0 : i32
    return %arg0, %c0_i32, %arg2 : i32, i32, i32
  }
  func.func @transform_3(%arg0: i32, %arg1: i32, %arg2: i32, %arg3: i32) -> (i32, i32, i32) {
    %c0_i32 = arith.constant 0 : i32
    return %arg0, %arg1, %arg2 : i32, i32, i32
  }
}

</mosaic_0001>

<bundles_post_ra>
// kernel: codis_forward.3
= control target key start
LH: loop header
LB: loop body
LE: loop exit
PB: predicated region body
PF: predicated region fallthrough
CT: control target
= control target key end

     0   :  { %s2468_s12 = smov 0   ;;  %s2470_s13 = smov 0   ;;  %s3095_s0 = inlined_call_operand.vmem [shape: bf16[2,512,75], index: 0, kind: input, shape index: {}]   ;;  %s3096_s1 = inlined_call_operand.vmem [shape: bf16[2,75,8], index: 1, kind: input, shape index: {}]   ;;  %s3097_s2 = inlined_call_operand.vmem [shape: f32[2,1,8], index: 2, kind: input, shape index: {}]   ;;  %s3098_s3 = inlined_call_operand.vmem [shape: bf16[2,512,8], index: 3, kind: output, shape index: {}]  }
   0x1   :  { %s2472_s14 = smov 0  }
   0x2 LB: > { %s39_s15 = sadd.s32 1, %s2440_s13  ;;  %p2028_p0 = scmp.ge.s32.totalorder %s2444_s14, 1  ;;  %s2444_s14 = sphi %s2472_s14, %s13_s14   ;;  %s2440_s13 = sphi %s2470_s13, %s3100_s13   ;;  %s2436_s12 = sphi %s2468_s12, %s3099_s12  }
   0x3   : > { %p41_p1 = scmp.ge.s32.totalorder %s39_s15, 2  ;;  %p214_p2 = scmp.lt.s32.totalorder %s2444_s14, 3 }
   0x5   : > { %s3102_s15 = smov (%p41_p1, %s39_s15), 0  ;;  %p215_p3 = pnand %p2028_p0, %p214_p2 }
   0x6   : > { %p271_p4 = scmp.lt.s32.totalorder (!%p215_p3), %s2436_s12, 1  ;;  %vm320_vm0 = vcmask (!%p215_p3), 64512   ;;  %v2446_v0 = vmov (!%p215_p3), 0.0   ;;  %vm809_vm1 = vcmask (!%p215_p3), 1044480   ;;  %vm810_vm2 = vcmask (!%p215_p3), 1045504  }
   0x7   : > { %218 = sbr.rel (%p215_p3) target bundleno = 368 (0x170), region = 32  ;;  %323 = vst.msk [vmem:[#allocation2 + $0x10] sm:$0xff] (!%p215_p3), %vm320_vm0, %v2446_v0  ;;  %321 = vst.msk [vmem:[#allocation2] sm:$0xff] (!%p215_p3), %vm320_vm0, %v2446_v0  ;;  %vm712_vm3 = vcmask (!%p215_p3), 613376   ;;  %v2447_v5 = vmov (!%p215_p3), 65535   ;;  %vm1820_vm4 = vcmask (!%p215_p3), 60416  }
   0x8   : > { %322 = vst.msk [vmem:[#allocation2 + $0x8] sm:$0xff] (!%p215_p3), %vm320_vm0, %v2446_v0  ;;  %324 = vst.msk [vmem:[#allocation2 + $0x18] sm:$0xff] (!%p215_p3), %vm320_vm0, %v2446_v0  ;;  %v811_v6 = vsel (!%p215_p3), %vm809_vm1, 4294967295, %v2447_v5 }
   0x9   : > { %325 = vst.msk [vmem:[#allocation2 + $0x20] sm:$0xff] (!%p215_p3), %vm320_vm0, %v2446_v0  ;;  %326 = vst.msk [vmem:[#allocation2 + $0x28] sm:$0xff] (!%p215_p3), %vm320_vm0, %v2446_v0  ;;  %v812_v10 = vsel (!%p215_p3), %vm810_vm2, %v811_v6, 0 }
   0xa   : > { %327 = vst.msk [vmem:[#allocation2 + $0x30] sm:$0xff] (!%p215_p3), %vm320_vm0, %v2446_v0  ;;  %328 = vst.msk [vmem:[#allocation2 + $0x38] sm:$0xff] (!%p215_p3), %vm320_vm0, %v2446_v0 }
   0xb   : > { %329 = vst.msk [vmem:[#allocation2 + $0x40] sm:$0xff] (!%p215_p3), %vm320_vm0, %v2446_v0  ;;  %330 = vst.msk [vmem:[#allocation2 + $0x48] sm:$0xff] (!%p215_p3), %vm320_vm0, %v2446_v0 }
   0xc   : > { %331 = vst.msk [vmem:[#allocation2 + $0x50] sm:$0xff] (!%p215_p3), %vm320_vm0, %v2446_v0  ;;  %332 = vst.msk [vmem:[#allocation2 + $0x58] sm:$0xff] (!%p215_p3), %vm320_vm0, %v2446_v0 }
   0xd   : > { %333 = vst.msk [vmem:[#allocation2 + $0x60] sm:$0xff] (!%p215_p3), %vm320_vm0, %v2446_v0  ;;  %334 = vst.msk [vmem:[#allocation2 + $0x68] sm:$0xff] (!%p215_p3), %vm320_vm0, %v2446_v0 }
   0xe   : > { %s3104_s12 = smov (!%p271_p4, %s2436_s12), 1  ;;  %335 = vst.msk [vmem:[#allocation2 + $0x70] sm:$0xff] %vm320_vm0, %v2446_v0  ;;  %336 = vst.msk [vmem:[#allocation2 + $0x78] sm:$0xff] %vm320_vm0, %v2446_v0  ;;  %v387_v42 = vld [vmem:[#allocation2 + $0x10] sm:$0xff]  ;;  %v385_v44 = vld [vmem:[#allocation2] sm:$0xff] }
   0xf   : > { %337 = vst.msk [vmem:[#allocation2 + $0x80] sm:$0xff] %vm320_vm0, %v2446_v0  ;;  %338 = vst.msk [vmem:[#allocation2 + $0x88] sm:$0xff] %vm320_vm0, %v2446_v0  ;;  %s2170_s16 = sshll.u32 %s3104_s12, 8  ;;  %s2357_s17 = smul.u32 40, %s3104_s12  ;;  %v388_v48 = vld [vmem:[#allocation2 + $0x18] sm:$0xff]  ;;  %v386_v54 = vld [vmem:[#allocation2 + $0x8] sm:$0xff] }
  0x10   : > { %339 = vst.msk [vmem:[#allocation2 + $0x90] sm:$0xff] %vm320_vm0, %v2446_v0  ;;  %340 = vst.msk [vmem:[#allocation2 + $0x98] sm:$0xff] %vm320_vm0, %v2446_v0  ;;  %s2623_s20 = scalar_lea.vmem %s3095_s0, %s2170_s16  ;;  %s2700_s26 = scalar_lea.vmem %s3097_s2, %s3104_s12 }
  0x11   : > { %341 = vst.msk [vmem:[#allocation2 + $0xa0] sm:$0xff] %vm320_vm0, %v2446_v0  ;;  %342 = vst.msk [vmem:[#allocation2 + $0xa8] sm:$0xff] %vm320_vm0, %v2446_v0  ;;  %s294_s23 = scalar_lea.vmem %s3096_s1, %s2357_s17  ;;  %v2389_v4 = vld [vmem:[%s2623_s20] sm:$0xff]   ;;  %v2391_v12 = vld [vmem:[%s2623_s20 + $0x8] sm:$0xff]   ;;  %s2726_s29 = scalar_lea.vmem %s3098_s3, %s2170_s16 }
  0x12   : > { %343 = vst.msk [vmem:[#allocation2 + $0xb0] sm:$0xff] %vm320_vm0, %v2446_v0  ;;  %344 = vst.msk [vmem:[#allocation2 + $0xb8] sm:$0xff] %vm320_vm0, %v2446_v0  ;;  %v2384_v1 = vld [vmem:[%s294_s23] sm:$0xff]   ;;  %v2385_v2 = vld [vmem:[%s294_s23 + $0x8] sm:$0xff]   ;;  %2283 = vmatprep.mubr.msk.bf16.mxu0 %vm712_vm3, %v2389_v4 }
  0x13   : > { %345 = vst.msk [vmem:[#allocation2 + $0xc0] sm:$0xff] %vm320_vm0, %v2446_v0  ;;  %346 = vst.msk [vmem:[#allocation2 + $0xc8] sm:$0xff] %vm320_vm0, %v2446_v0  ;;  %2273 = vmatprep.subr.bf16.mxu0 %v2384_v1  ;;  %2347 = vmatprep.subr.bf16.mxu1 %v2384_v1  ;;  %v2386_v3 = vld [vmem:[%s294_s23 + $0x10] sm:$0xff]   ;;  %v2390_v7 = vld [vmem:[%s2623_s20 + $0x80] sm:$0xff]  }
  0x14   : > { %347 = vst.msk [vmem:[#allocation2 + $0xd0] sm:$0xff] %vm320_vm0, %v2446_v0  ;;  %348 = vst.msk [vmem:[#allocation2 + $0xd8] sm:$0xff] %vm320_vm0, %v2446_v0  ;;  %2274 = vmatpush3.bf16.msra.mxu0 %v2384_v1  ;;  %2352 = vmatpush3.bf16.msra.mxu1 %v2384_v1  ;;  %v2387_v8 = vld [vmem:[%s294_s23 + $0x18] sm:$0xff]   ;;  %v2388_v9 = vld [vmem:[%s294_s23 + $0x20] sm:$0x3f]  }
  0x15   : > { %349 = vst.msk [vmem:[#allocation2 + $0xe0] sm:$0xff] %vm320_vm0, %v2446_v0  ;;  %350 = vst.msk [vmem:[#allocation2 + $0xe8] sm:$0xff] %vm320_vm0, %v2446_v0  ;;  %2275 = vmatprep.subr.bf16.mxu0 %v2385_v2  ;;  %2348 = vmatprep.subr.bf16.mxu1 %v2385_v2  ;;  %v814_v11 = vand.u32 %v2388_v9, %v812_v10  ;;  %v2392_v13 = vld [vmem:[%s2623_s20 + $0x88] sm:$0xff]   ;;  %v2393_v14 = vld [vmem:[%s2623_s20 + $0x10] sm:$0xff]  }
  0x16   : > { %351 = vst.msk [vmem:[#allocation2 + $0xf0] sm:$0xff] %vm320_vm0, %v2446_v0  ;;  %352 = vst.msk [vmem:[#allocation2 + $0xf8] sm:$0xff] %vm320_vm0, %v2446_v0  ;;  %2315 = vmatprep.mubr.msk.bf16.mxu1 %vm712_vm3, %v2390_v7  ;;  %v2394_v15 = vld [vmem:[%s2623_s20 + $0x90] sm:$0xff]   ;;  %v2395_v16 = vld [vmem:[%s2623_s20 + $0x18] sm:$0xff]  }
  0x17   : > { %353 = vst.msk [vmem:[#allocation2 + $0x100] sm:$0xff] %vm320_vm0, %v2446_v0  ;;  %354 = vst.msk [vmem:[#allocation2 + $0x108] sm:$0xff] %vm320_vm0, %v2446_v0  ;;  %v2396_v17 = vld [vmem:[%s2623_s20 + $0x98] sm:$0xff]   ;;  %v2397_v18 = vld [vmem:[%s2623_s20 + $0x20] sm:$0xff]  }
  0x18   : > { %355 = vst.msk [vmem:[#allocation2 + $0x110] sm:$0xff] %vm320_vm0, %v2446_v0  ;;  %356 = vst.msk [vmem:[#allocation2 + $0x118] sm:$0xff] %vm320_vm0, %v2446_v0  ;;  %2276 = vmatpush3.bf16.msra.mxu0 %v2385_v2  ;;  %2353 = vmatpush3.bf16.msra.mxu1 %v2385_v2  ;;  %v2398_v19 = vld [vmem:[%s2623_s20 + $0xa0] sm:$0xff]   ;;  %v2399_v20 = vld [vmem:[%s2623_s20 + $0x28] sm:$0xff]  }
  0x19   : > { %357 = vst.msk [vmem:[#allocation2 + $0x120] sm:$0xff] %vm320_vm0, %v2446_v0  ;;  %358 = vst.msk [vmem:[#allocation2 + $0x128] sm:$0xff] %vm320_vm0, %v2446_v0  ;;  %2277 = vmatprep.subr.bf16.mxu0 %v2386_v3  ;;  %2349 = vmatprep.subr.bf16.mxu1 %v2386_v3  ;;  %v2400_v21 = vld [vmem:[%s2623_s20 + $0xa8] sm:$0xff]   ;;  %v2401_v22 = vld [vmem:[%s2623_s20 + $0x30] sm:$0xff]  }
  0x1a   : > { %359 = vst.msk [vmem:[#allocation2 + $0x130] sm:$0xff] %vm320_vm0, %v2446_v0  ;;  %360 = vst.msk [vmem:[#allocation2 + $0x138] sm:$0xff] %vm320_vm0, %v2446_v0  ;;  %v2402_v23 = vld [vmem:[%s2623_s20 + $0xb0] sm:$0xff]   ;;  %v2403_v24 = vld [vmem:[%s2623_s20 + $0x38] sm:$0xff]  }
  0x1b   : > { %361 = vst.msk [vmem:[#allocation2 + $0x140] sm:$0xff] %vm320_vm0, %v2446_v0  ;;  %362 = vst.msk [vmem:[#allocation2 + $0x148] sm:$0xff] %vm320_vm0, %v2446_v0  ;;  %v2404_v25 = vld [vmem:[%s2623_s20 + $0xb8] sm:$0xff]   ;;  %v2405_v26 = vld [vmem:[%s2623_s20 + $0x40] sm:$0xff]  }
  0x1c   : > { %363 = vst.msk [vmem:[#allocation2 + $0x150] sm:$0xff] %vm320_vm0, %v2446_v0  ;;  %364 = vst.msk [vmem:[#allocation2 + $0x158] sm:$0xff] %vm320_vm0, %v2446_v0  ;;  %2278 = vmatpush3.bf16.msra.mxu0 %v2386_v3  ;;  %2354 = vmatpush3.bf16.msra.mxu1 %v2386_v3  ;;  %v2406_v27 = vld [vmem:[%s2623_s20 + $0xc0] sm:$0xff]   ;;  %v2407_v28 = vld [vmem:[%s2623_s20 + $0x48] sm:$0xff]  }
  0x1d   : > { %365 = vst.msk [vmem:[#allocation2 + $0x160] sm:$0xff] %vm320_vm0, %v2446_v0  ;;  %366 = vst.msk [vmem:[#allocation2 + $0x168] sm:$0xff] %vm320_vm0, %v2446_v0  ;;  %2279 = vmatprep.subr.bf16.mxu0 %v2387_v8  ;;  %2350 = vmatprep.subr.bf16.mxu1 %v2387_v8  ;;  %v2408_v29 = vld [vmem:[%s2623_s20 + $0xc8] sm:$0xff]   ;;  %v2409_v30 = vld [vmem:[%s2623_s20 + $0x50] sm:$0xff]  }
  0x1e   : > { %367 = vst.msk [vmem:[#allocation2 + $0x170] sm:$0xff] %vm320_vm0, %v2446_v0  ;;  %368 = vst.msk [vmem:[#allocation2 + $0x178] sm:$0xff] %vm320_vm0, %v2446_v0  ;;  %v2410_v31 = vld [vmem:[%s2623_s20 + $0xd0] sm:$0xff]   ;;  %v2411_v32 = vld [vmem:[%s2623_s20 + $0x58] sm:$0xff]  }
  0x1f   : > { %369 = vst.msk [vmem:[#allocation2 + $0x180] sm:$0xff] %vm320_vm0, %v2446_v0  ;;  %370 = vst.msk [vmem:[#allocation2 + $0x188] sm:$0xff] %vm320_vm0, %v2446_v0  ;;  %v2412_v33 = vld [vmem:[%s2623_s20 + $0xd8] sm:$0xff]   ;;  %v2413_v34 = vld [vmem:[%s2623_s20 + $0x60] sm:$0xff]  }
  0x20   : > { %371 = vst.msk [vmem:[#allocation2 + $0x190] sm:$0xff] %vm320_vm0, %v2446_v0  ;;  %372 = vst.msk [vmem:[#allocation2 + $0x198] sm:$0xff] %vm320_vm0, %v2446_v0  ;;  %2280 = vmatpush3.bf16.msra.mxu0 %v2387_v8  ;;  %2355 = vmatpush3.bf16.msra.mxu1 %v2387_v8  ;;  %v2414_v35 = vld [vmem:[%s2623_s20 + $0xe0] sm:$0xff]   ;;  %v2415_v36 = vld [vmem:[%s2623_s20 + $0x68] sm:$0xff]  }
  0x21   : > { %373 = vst.msk [vmem:[#allocation2 + $0x1a0] sm:$0xff] %vm320_vm0, %v2446_v0  ;;  %374 = vst.msk [vmem:[#allocation2 + $0x1a8] sm:$0xff] %vm320_vm0, %v2446_v0  ;;  %2281 = vmatprep.subr.bf16.mxu0 %v814_v11  ;;  %2351 = vmatprep.subr.bf16.mxu1 %v814_v11  ;;  %v2416_v37 = vld [vmem:[%s2623_s20 + $0xe8] sm:$0xff]   ;;  %v2417_v38 = vld [vmem:[%s2623_s20 + $0x70] sm:$0xff]  }
  0x22   : > { %375 = vst.msk [vmem:[#allocation2 + $0x1b0] sm:$0xff] %vm320_vm0, %v2446_v0  ;;  %376 = vst.msk [vmem:[#allocation2 + $0x1b8] sm:$0xff] %vm320_vm0, %v2446_v0  ;;  %v2418_v39 = vld [vmem:[%s2623_s20 + $0xf0] sm:$0xff]   ;;  %v2419_v40 = vld [vmem:[%s2623_s20 + $0x78] sm:$0xff]  }
  0x23   : > { %377 = vst.msk [vmem:[#allocation2 + $0x1c0] sm:$0xff] %vm320_vm0, %v2446_v0  ;;  %378 = vst.msk [vmem:[#allocation2 + $0x1c8] sm:$0xff] %vm320_vm0, %v2446_v0  ;;  %v2420_v41 = vld [vmem:[%s2623_s20 + $0xf8] sm:$0xff]   ;;  %v419_v43 = vld [vmem:[#allocation2 + $0x110] sm:$0xff] }
  0x24   : > { %379 = vst.msk [vmem:[#allocation2 + $0x1d0] sm:$0xff] %vm320_vm0, %v2446_v0  ;;  %380 = vst.msk [vmem:[#allocation2 + $0x1d8] sm:$0xff] %vm320_vm0, %v2446_v0  ;;  %2282 = vmatpush3.bf16.msra.mxu0 %v814_v11  ;;  %2356 = vmatpush3.bf16.msra.mxu1 %v814_v11  ;;  %v417_v45 = vld [vmem:[#allocation2 + $0x100] sm:$0xff]  ;;  %v420_v49 = vld [vmem:[#allocation2 + $0x118] sm:$0xff] }
  0x25   : > { %381 = vst.msk [vmem:[#allocation2 + $0x1e0] sm:$0xff] %vm320_vm0, %v2446_v0  ;;  %382 = vst.msk [vmem:[#allocation2 + $0x1e8] sm:$0xff] %vm320_vm0, %v2446_v0  ;;  %v418_v55 = vld [vmem:[#allocation2 + $0x108] sm:$0xff]  ;;  %v391_v2 = vld [vmem:[#allocation2 + $0x30] sm:$0xff] }
  0x26   : > { %383 = vst.msk [vmem:[#allocation2 + $0x1f0] sm:$0xff] %vm320_vm0, %v2446_v0  ;;  %384 = vst.msk [vmem:[#allocation2 + $0x1f8] sm:$0xff] %vm320_vm0, %v2446_v0  ;;  %v423_v3 = vld [vmem:[#allocation2 + $0x130] sm:$0xff]  ;;  %v389_v4 = vld [vmem:[#allocation2 + $0x20] sm:$0xff] }
  0x27   : > { %2284 = vmatmul.mubr.msk.bf16.vlgmr.msra.gmra.mrb[0].mxu0 %vm712_vm3, %v2391_v12  ;;  %2316 = vmatmul.mubr.msk.bf16.vlgmr.msra.gmra.mrb[0].mxu1 %vm712_vm3, %v2392_v13  ;;  %v421_v5 = vld [vmem:[#allocation2 + $0x120] sm:$0xff]  ;;  %v392_v9 = vld [vmem:[#allocation2 + $0x38] sm:$0xff] }
  0x28   : > { %2287 = vmatprep.mubr.msk.bf16.mxu0 %vm712_vm3, %v2393_v14  ;;  %2319 = vmatprep.mubr.msk.bf16.mxu1 %vm712_vm3, %v2394_v15  ;;  %v2707_v6 = vld [vmem:[%s2700_s26] ss:$0 sm:$0xff]  ;;  %v424_v10 = vld [vmem:[#allocation2 + $0x138] sm:$0xff]  ;;  %v390_v15 = vld [vmem:[#allocation2 + $0x28] sm:$0xff] }
  0x2f   : > { %2288 = vmatmul.mubr.msk.bf16.gmra.mrb[4].mxu0 %vm712_vm3, %v2395_v16  ;;  %2320 = vmatmul.mubr.msk.bf16.gmra.mrb[4].mxu1 %vm712_vm3, %v2396_v17  ;;  %v422_v16 = vld [vmem:[#allocation2 + $0x128] sm:$0xff] }
  0x30   : > { %2291 = vmatprep.mubr.msk.bf16.mxu0 %vm712_vm3, %v2397_v18  ;;  %2323 = vmatprep.mubr.msk.bf16.mxu1 %vm712_vm3, %v2398_v19 }
  0x37   : > { %2292 = vmatmul.mubr.msk.bf16.gmra.mrb[8].mxu0 %vm712_vm3, %v2399_v20  ;;  %2324 = vmatmul.mubr.msk.bf16.gmra.mrb[8].mxu1 %vm712_vm3, %v2400_v21 }
  0x38   : > { %2295 = vmatprep.mubr.msk.bf16.mxu0 %vm712_vm3, %v2401_v22  ;;  %2327 = vmatprep.mubr.msk.bf16.mxu1 %vm712_vm3, %v2402_v23 }
  0x3f   : > { %2296 = vmatmul.mubr.msk.bf16.gmra.mrb[12].mxu0 %vm712_vm3, %v2403_v24  ;;  %2328 = vmatmul.mubr.msk.bf16.gmra.mrb[12].mxu1 %vm712_vm3, %v2404_v25 }
  0x40   : > { %2299 = vmatprep.mubr.msk.bf16.mxu0 %vm712_vm3, %v2405_v26  ;;  %2331 = vmatprep.mubr.msk.bf16.mxu1 %vm712_vm3, %v2406_v27 }
  0x47   : > { %2300 = vmatmul.mubr.msk.bf16.gmra.mrb[16].mxu0 %vm712_vm3, %v2407_v28  ;;  %2332 = vmatmul.mubr.msk.bf16.gmra.mrb[16].mxu1 %vm712_vm3, %v2408_v29 }
  0x48   : > { %2303 = vmatprep.mubr.msk.bf16.mxu0 %vm712_vm3, %v2409_v30  ;;  %2335 = vmatprep.mubr.msk.bf16.mxu1 %vm712_vm3, %v2410_v31 }
  0x4f   : > { %2304 = vmatmul.mubr.msk.bf16.gmra.mrb[20].mxu0 %vm712_vm3, %v2411_v32  ;;  %2336 = vmatmul.mubr.msk.bf16.gmra.mrb[20].mxu1 %vm712_vm3, %v2412_v33 }
  0x50   : > { %2307 = vmatprep.mubr.msk.bf16.mxu0 %vm712_vm3, %v2413_v34  ;;  %2339 = vmatprep.mubr.msk.bf16.mxu1 %vm712_vm3, %v2414_v35 }
  0x57   : > { %2308 = vmatmul.mubr.msk.bf16.gmra.mrb[24].mxu0 %vm712_vm3, %v2415_v36  ;;  %2340 = vmatmul.mubr.msk.bf16.gmra.mrb[24].mxu1 %vm712_vm3, %v2416_v37 }
  0x58   : > { %2311 = vmatprep.mubr.msk.bf16.mxu0 %vm712_vm3, %v2417_v38  ;;  %2343 = vmatprep.mubr.msk.bf16.mxu1 %vm712_vm3, %v2418_v39 }
  0x5f   : > { %2312 = vmatmul.mubr.msk.bf16.gmra.mrb[28].mxu0 %vm712_vm3, %v2419_v40  ;;  %2344 = vmatmul.mubr.msk.bf16.gmra.mrb[28].mxu1 %vm712_vm3, %v2420_v41 }
  0xfa   : > { %v2285_v46 = vpop.f32.mrb[0].mxu0  ;;  %v2317_v47 = vpop.f32.mrb[0].mxu1 }
  0xfb   : > { %v1107_v50 = vadd.f32 %v2285_v46, %v387_v42  ;;  %v1139_v51 = vadd.f32 %v2317_v47, %v419_v43  ;;  %v850_v52 = vpop.f32.mrb[1].mxu0  ;;  %v978_v53 = vpop.f32.mrb[1].mxu1 }
  0xfc   : > { %v1105_v56 = vadd.f32 %v850_v52, %v385_v44  ;;  %v1137_v57 = vadd.f32 %v978_v53, %v417_v45  ;;  %v2286_v58 = vpop.f32.mrb[2].mxu0  ;;  %v2318_v59 = vpop.f32.mrb[2].mxu1 }
  0xfd   : > { %1172 = vst.msk [vmem:[#allocation2 + $0x10] sm:$0xff] %vm320_vm0, %v1107_v50  ;;  %1204 = vst.msk [vmem:[#allocation2 + $0x110] sm:$0xff] %vm320_vm0, %v1139_v51  ;;  %v1108_v60 = vadd.f32 %v2286_v58, %v388_v48  ;;  %v1140_v61 = vadd.f32 %v2318_v59, %v420_v49  ;;  %v853_v62 = vpop.f32.mrb[3].mxu0  ;;  %v981_v63 = vpop.f32.mrb[3].mxu1  ;;  %v395_v51 = vld [vmem:[#allocation2 + $0x50] sm:$0xff] }
  0xfe   : > { %1170 = vst.msk [vmem:[#allocation2] sm:$0xff] %vm320_vm0, %v1105_v56  ;;  %1202 = vst.msk [vmem:[#allocation2 + $0x100] sm:$0xff] %vm320_vm0, %v1137_v57  ;;  %v1106_v0 = vadd.f32 %v853_v62, %v386_v54  ;;  %v1138_v1 = vadd.f32 %v981_v63, %v418_v55 }
  0xff   : > { %1173 = vst.msk [vmem:[#allocation2 + $0x18] sm:$0xff] %vm320_vm0, %v1108_v60  ;;  %1205 = vst.msk [vmem:[#allocation2 + $0x118] sm:$0xff] %vm320_vm0, %v1140_v61 }
 0x100   : > { %1171 = vst.msk [vmem:[#allocation2 + $0x8] sm:$0xff] %vm320_vm0, %v1106_v0  ;;  %1203 = vst.msk [vmem:[#allocation2 + $0x108] sm:$0xff] %vm320_vm0, %v1138_v1 }
 0x102   : > { %v2289_v7 = vpop.f32.mrb[4].mxu0  ;;  %v2321_v8 = vpop.f32.mrb[4].mxu1 }
 0x103   : > { %v1111_v11 = vadd.f32 %v2289_v7, %v391_v2  ;;  %v1143_v12 = vadd.f32 %v2321_v8, %v423_v3  ;;  %v866_v13 = vpop.f32.mrb[5].mxu0  ;;  %v994_v14 = vpop.f32.mrb[5].mxu1 }
 0x104   : > { %v1239_v17 = vld [vmem:[#allocation2 + $0x10] sm:$0xff]  ;;  %v1109_v19 = vadd.f32 %v866_v13, %v389_v4  ;;  %v1141_v20 = vadd.f32 %v994_v14, %v421_v5  ;;  %v2290_v21 = vpop.f32.mrb[6].mxu0  ;;  %v2322_v22 = vpop.f32.mrb[6].mxu1 }
 0x105   : > { %v1271_v18 = vld [vmem:[#allocation2 + $0x110] sm:$0xff]  ;;  %v1310_v23 = vadd.f32 %v2707_v6, %v1239_v17  ;;  %v1237_v25 = vld [vmem:[#allocation2] sm:$0xff]  ;;  %1176 = vst.msk [vmem:[#allocation2 + $0x30] sm:$0xff] %vm320_vm0, %v1111_v11  ;;  %1208 = vst.msk [vmem:[#allocation2 + $0x130] sm:$0xff] %vm320_vm0, %v1143_v12  ;;  %v1112_v27 = vadd.f32 %v2290_v21, %v392_v9  ;;  %v1144_v28 = vadd.f32 %v2322_v22, %v424_v10  ;;  %v869_v29 = vpop.f32.mrb[7].mxu0  ;;  %v997_v30 = vpop.f32.mrb[7].mxu1 }
 0x106   : > { %v1342_v24 = vadd.f32 %v2707_v6, %v1271_v18  ;;  %v1269_v26 = vld [vmem:[#allocation2 + $0x100] sm:$0xff]  ;;  %v1308_v31 = vadd.f32 %v2707_v6, %v1237_v25  ;;  %v1240_v33 = vld [vmem:[#allocation2 + $0x18] sm:$0xff]  ;;  %1174 = vst.msk [vmem:[#allocation2 + $0x20] sm:$0xff] %vm320_vm0, %v1109_v19  ;;  %1206 = vst.msk [vmem:[#allocation2 + $0x120] sm:$0xff] %vm320_vm0, %v1141_v20  ;;  %v1110_v35 = vadd.f32 %v869_v29, %v390_v15 }
 0x107   : > { %v1340_v32 = vadd.f32 %v2707_v6, %v1269_v26  ;;  %v1272_v34 = vld [vmem:[#allocation2 + $0x118] sm:$0xff]  ;;  %v1142_v36 = vadd.f32 %v997_v30, %v422_v16  ;;  %vm1374_vm5 = vcmp.ge.f32.partialorder %v1310_v23, 0.0  ;;  %v1438_v37 = vmul.f32 0.01, %v1310_v23  ;;  %1177 = vst.msk [vmem:[#allocation2 + $0x38] sm:$0xff] %vm320_vm0, %v1112_v27  ;;  %1209 = vst.msk [vmem:[#allocation2 + $0x138] sm:$0xff] %vm320_vm0, %v1144_v28 }
 0x108   : > { %vm1406_vm6 = vcmp.ge.f32.partialorder %v1342_v24, 0.0  ;;  %v1470_v38 = vmul.f32 0.01, %v1342_v24  ;;  %vm1372_vm7 = vcmp.ge.f32.partialorder %v1308_v31, 0.0  ;;  %v1436_v39 = vmul.f32 0.01, %v1308_v31 }
 0x109   : > { %vm1404_vm8 = vcmp.ge.f32.partialorder %v1340_v32, 0.0  ;;  %v1468_v40 = vmul.f32 0.01, %v1340_v32  ;;  %1175 = vst.msk [vmem:[#allocation2 + $0x28] sm:$0xff] %vm320_vm0, %v1110_v35  ;;  %1207 = vst.msk [vmem:[#allocation2 + $0x128] sm:$0xff] %vm320_vm0, %v1142_v36  ;;  %v1502_v41 = vsel %vm1374_vm5, %v1310_v23, %v1438_v37  ;;  %v1311_v43 = vadd.f32 %v2707_v6, %v1240_v33  ;;  %v1238_v45 = vld [vmem:[#allocation2 + $0x8] sm:$0xff] }
 0x10a   : > { %v1534_v42 = vsel %vm1406_vm6, %v1342_v24, %v1470_v38  ;;  %v1343_v44 = vadd.f32 %v2707_v6, %v1272_v34  ;;  %v1270_v46 = vld [vmem:[#allocation2 + $0x108] sm:$0xff]  ;;  %v2174_v47 = vpack.c.bf16 %v1502_v41, %v1502_v41  ;;  %v1500_v49 = vsel %vm1372_vm7, %v1308_v31, %v1436_v39  ;;  %v2293_v52 = vpop.f32.mrb[8].mxu0  ;;  %v2730_v53 = vpop.f32.mrb[8].mxu1  ;;  %v427_v36 = vld [vmem:[#allocation2 + $0x150] sm:$0xff] }
 0x10b   : > { %v2206_v48 = vpack.c.bf16 %v1534_v42, %v1534_v42  ;;  %v1532_v50 = vsel %vm1404_vm8, %v1340_v32, %v1468_v40  ;;  %v2172_v54 = vpack.c.bf16 %v1500_v49, %v1500_v49  ;;  %vm1375_vm9 = vcmp.ge.f32.partialorder %v1311_v43, 0.0  ;;  %v2732_v57 = vpop.f32.mrb[9].mxu0  ;;  %v2734_v58 = vpop.f32.mrb[9].mxu1 }
 0x10c   : > { %v2204_v55 = vpack.c.bf16 %v1532_v50, %v1532_v50  ;;  %v1439_v56 = vmul.f32 0.01, %v1311_v43  ;;  %1823 = vst.msk [vmem:[%s2726_s29 + $0x8] sm:$0xf] %vm1820_vm4, %v2174_v47  ;;  %vm1407_vm10 = vcmp.ge.f32.partialorder %v1343_v44, 0.0  ;;  %v1309_v60 = vadd.f32 %v2707_v6, %v1238_v45  ;;  %v1243_v62 = vld [vmem:[#allocation2 + $0x30] sm:$0xff] }
 0x10d   : > { %1855 = vst.msk [vmem:[%s2726_s29 + $0x88] sm:$0xf] %vm1820_vm4, %v2206_v48  ;;  %v1471_v59 = vmul.f32 0.01, %v1343_v44  ;;  %v1341_v61 = vadd.f32 %v2707_v6, %v1270_v46  ;;  %v1275_v63 = vld [vmem:[#allocation2 + $0x130] sm:$0xff]  ;;  %v2742_v0 = vpop.f32.mrb[10].mxu0  ;;  %v1314_v2 = vadd.f32 %v2707_v6, %v1243_v62  ;;  %v1115_v4 = vadd.f32 %v2293_v52, %v395_v51 }
 0x10e   : > { %1821 = vst.msk [vmem:[%s2726_s29] sm:$0xf] %vm1820_vm4, %v2172_v54  ;;  %1853 = vst.msk [vmem:[%s2726_s29 + $0x80] sm:$0xf] %vm1820_vm4, %v2204_v55  ;;  %v1503_v1 = vsel %vm1375_vm9, %v1311_v43, %v1439_v56  ;;  %v1346_v3 = vadd.f32 %v2707_v6, %v1275_v63  ;;  %v2750_v5 = vpop.f32.mrb[10].mxu1  ;;  %v2752_v7 = vpop.f32.mrb[11].mxu0  ;;  %v1147_v52 = vadd.f32 %v2730_v53, %v427_v36 }
 0x10f   : > { %v2175_v8 = vpack.c.bf16 %v1503_v1, %v1503_v1  ;;  %v1535_v9 = vsel %vm1407_vm10, %v1343_v44, %v1471_v59  ;;  %vm1373_vm11 = vcmp.ge.f32.partialorder %v1309_v60, 0.0  ;;  %v1437_v10 = vmul.f32 0.01, %v1309_v60  ;;  %v1241_v11 = vld [vmem:[#allocation2 + $0x20] sm:$0xff]  ;;  %v2755_v13 = vpop.f32.mrb[11].mxu1  ;;  %v1244_v16 = vld [vmem:[#allocation2 + $0x38] sm:$0xff] }
 0x110   : > { %v1273_v12 = vld [vmem:[#allocation2 + $0x120] sm:$0xff]  ;;  %v2207_v14 = vpack.c.bf16 %v1535_v9, %v1535_v9  ;;  %vm1405_vm12 = vcmp.ge.f32.partialorder %v1341_v61, 0.0  ;;  %v1469_v15 = vmul.f32 0.01, %v1341_v61  ;;  %vm1378_vm13 = vcmp.ge.f32.partialorder %v1314_v2, 0.0  ;;  %1180 = vst.msk [vmem:[#allocation2 + $0x50] sm:$0xff] %vm320_vm0, %v1115_v4 }
 0x111   : > { %1824 = vst.msk [vmem:[%s2726_s29 + $0xc] sm:$0xf] %vm1820_vm4, %v2175_v8  ;;  %v1501_v17 = vsel %vm1373_vm11, %v1309_v60, %v1437_v10  ;;  %v1442_v18 = vmul.f32 0.01, %v1314_v2  ;;  %vm1410_vm14 = vcmp.ge.f32.partialorder %v1346_v3, 0.0  ;;  %v1312_v22 = vadd.f32 %v2707_v6, %v1241_v11  ;;  %v1276_v28 = vld [vmem:[#allocation2 + $0x138] sm:$0xff] }
 0x112   : > { %v1474_v19 = vmul.f32 0.01, %v1346_v3  ;;  %1856 = vst.msk [vmem:[%s2726_s29 + $0x8c] sm:$0xf] %vm1820_vm4, %v2207_v14  ;;  %v2173_v20 = vpack.c.bf16 %v1501_v17, %v1501_v17  ;;  %v1533_v21 = vsel %vm1405_vm12, %v1341_v61, %v1469_v15  ;;  %v1344_v23 = vadd.f32 %v2707_v6, %v1273_v12  ;;  %v1242_v29 = vld [vmem:[#allocation2 + $0x28] sm:$0xff]  ;;  %v2765_v31 = vpop.f32.mrb[12].mxu0 }
 0x113   : > { %v2205_v24 = vpack.c.bf16 %v1533_v21, %v1533_v21  ;;  %v1506_v25 = vsel %vm1378_vm13, %v1314_v2, %v1442_v18  ;;  %v1315_v27 = vadd.f32 %v2707_v6, %v1244_v16  ;;  %v1274_v30 = vld [vmem:[#allocation2 + $0x128] sm:$0xff]  ;;  %v2767_v32 = vpop.f32.mrb[12].mxu1  ;;  %vm1376_vm15 = vcmp.ge.f32.partialorder %v1312_v22, 0.0  ;;  %v2771_v37 = vpop.f32.mrb[13].mxu0  ;;  %v393_v45 = vld [vmem:[#allocation2 + $0x40] sm:$0xff]  ;;  %v396_v55 = vld [vmem:[#allocation2 + $0x58] sm:$0xff] }
 0x114   : > { %v1538_v26 = vsel %vm1410_vm14, %v1346_v3, %v1474_v19  ;;  %1822 = vst.msk [vmem:[%s2726_s29 + $0x4] sm:$0xf] %vm1820_vm4, %v2173_v20  ;;  %v2178_v33 = vpack.c.bf16 %v1506_v25, %v1506_v25  ;;  %v1440_v35 = vmul.f32 0.01, %v1312_v22  ;;  %v2773_v38 = vpop.f32.mrb[13].mxu1  ;;  %vm1408_vm1 = vcmp.ge.f32.partialorder %v1344_v23, 0.0 }
 0x115   : > { %v2210_v34 = vpack.c.bf16 %v1538_v26, %v1538_v26  ;;  %1854 = vst.msk [vmem:[%s2726_s29 + $0x84] sm:$0xf] %vm1820_vm4, %v2205_v24  ;;  %v1472_v39 = vmul.f32 0.01, %v1344_v23  ;;  %vm1379_vm2 = vcmp.ge.f32.partialorder %v1315_v27, 0.0  ;;  %v1347_v42 = vadd.f32 %v2707_v6, %v1276_v28  ;;  %v2784_v46 = vpop.f32.mrb[14].mxu0 }
 0x116   : > { %v1443_v40 = vmul.f32 0.01, %v1315_v27  ;;  %1827 = vst.msk [vmem:[%s2726_s29 + $0x18] sm:$0xf] %vm1820_vm4, %v2178_v33  ;;  %v1504_v41 = vsel %vm1376_vm15, %v1312_v22, %v1440_v35  ;;  %v1313_v43 = vadd.f32 %v2707_v6, %v1242_v29  ;;  %v1345_v44 = vadd.f32 %v2707_v6, %v1274_v30  ;;  %v2786_v47 = vpop.f32.mrb[14].mxu1  ;;  %v425_v54 = vld [vmem:[#allocation2 + $0x140] sm:$0xff] }
 0x117   : > { %1859 = vst.msk [vmem:[%s2726_s29 + $0x98] sm:$0xf] %vm1820_vm4, %v2210_v34  ;;  %v2176_v48 = vpack.c.bf16 %v1504_v41, %v1504_v41  ;;  %v1536_v49 = vsel %vm1408_vm1, %v1344_v23, %v1472_v39  ;;  %v1247_v51 = vld [vmem:[#allocation2 + $0x50] sm:$0xff]  ;;  %v2789_v56 = vpop.f32.mrb[15].mxu0  ;;  %v2791_v59 = vpop.f32.mrb[15].mxu1  ;;  %vm1411_vm3 = vcmp.ge.f32.partialorder %v1347_v42, 0.0  ;;  %v1113_v10 = vadd.f32 %v2732_v57, %v393_v45 }
 0x118   : > { %v1507_v50 = vsel %vm1379_vm2, %v1315_v27, %v1443_v40  ;;  %v2208_v60 = vpack.c.bf16 %v1536_v49, %v1536_v49  ;;  %v1475_v62 = vmul.f32 0.01, %v1347_v42  ;;  %v428_v63 = vld [vmem:[#allocation2 + $0x158] sm:$0xff]  ;;  %v394_v1 = vld [vmem:[#allocation2 + $0x48] sm:$0xff]  ;;  %v399_v3 = vld [vmem:[#allocation2 + $0x70] sm:$0xff]  ;;  %vm1377_vm5 = vcmp.ge.f32.partialorder %v1313_v43, 0.0 }
 0x119   : > { %v2179_v61 = vpack.c.bf16 %v1507_v50, %v1507_v50  ;;  %v426_v2 = vld [vmem:[#allocation2 + $0x148] sm:$0xff]  ;;  %1825 = vst.msk [vmem:[%s2726_s29 + $0x10] sm:$0xf] %vm1820_vm4, %v2176_v48  ;;  %v1441_v53 = vmul.f32 0.01, %v1313_v43  ;;  %vm1409_vm6 = vcmp.ge.f32.partialorder %v1345_v44, 0.0  ;;  %v1318_v9 = vadd.f32 %v2707_v6, %v1247_v51 }
 0x11a   : > { %v1473_v4 = vmul.f32 0.01, %v1345_v44  ;;  %1212 = vst.msk [vmem:[#allocation2 + $0x150] sm:$0xff] %vm320_vm0, %v1147_v52  ;;  %v1539_v8 = vsel %vm1411_vm3, %v1347_v42, %v1475_v62  ;;  %v1145_v11 = vadd.f32 %v2734_v58, %v425_v54  ;;  %v431_v12 = vld [vmem:[#allocation2 + $0x170] sm:$0xff]  ;;  %v397_v14 = vld [vmem:[#allocation2 + $0x60] sm:$0xff]  ;;  %v1116_v19 = vadd.f32 %v2742_v0, %v396_v55  ;;  %v400_v20 = vld [vmem:[#allocation2 + $0x78] sm:$0xff] }
 0x11b   : > { %1857 = vst.msk [vmem:[%s2726_s29 + $0x90] sm:$0xf] %vm1820_vm4, %v2208_v60  ;;  %1828 = vst.msk [vmem:[%s2726_s29 + $0x1c] sm:$0xf] %vm1820_vm4, %v2179_v61  ;;  %v429_v15 = vld [vmem:[#allocation2 + $0x160] sm:$0xff]  ;;  %v2211_v16 = vpack.c.bf16 %v1539_v8, %v1539_v8  ;;  %v1505_v17 = vsel %vm1377_vm5, %v1313_v43, %v1441_v53  ;;  %v432_v21 = vld [vmem:[#allocation2 + $0x178] sm:$0xff]  ;;  %v1148_v0 = vadd.f32 %v2750_v5, %v428_v63 }
 0x11c   : > { %v1537_v18 = vsel %vm1409_vm6, %v1345_v44, %v1473_v4  ;;  %v398_v22 = vld [vmem:[#allocation2 + $0x68] sm:$0xff]  ;;  %v2301_v23 = vpop.f32.mrb[16].mxu0  ;;  %v2333_v24 = vpop.f32.mrb[16].mxu1  ;;  %v2177_v25 = vpack.c.bf16 %v1505_v17, %v1505_v17  ;;  %vm1382_vm7 = vcmp.ge.f32.partialorder %v1318_v9, 0.0  ;;  %v1446_v57 = vmul.f32 0.01, %v1318_v9 }
 0x11d   : > { %v2209_v26 = vpack.c.bf16 %v1537_v18, %v1537_v18  ;;  %1178 = vst.msk [vmem:[#allocation2 + $0x40] sm:$0xff] %vm320_vm0, %v1113_v10  ;;  %1210 = vst.msk [vmem:[#allocation2 + $0x140] sm:$0xff] %vm320_vm0, %v1145_v11  ;;  %v430_v58 = vld [vmem:[#allocation2 + $0x168] sm:$0xff]  ;;  %v914_v27 = vpop.f32.mrb[17].mxu0  ;;  %v1042_v28 = vpop.f32.mrb[17].mxu1  ;;  %v1114_v29 = vadd.f32 %v2752_v7, %v394_v1  ;;  %v1146_v30 = vadd.f32 %v2755_v13, %v426_v2  ;;  %v403_v34 = vld [vmem:[#allocation2 + $0x90] sm:$0xff] }
 0x11e   : > { %1860 = vst.msk [vmem:[%s2726_s29 + $0x9c] sm:$0xf] %vm1820_vm4, %v2211_v16  ;;  %v1119_v33 = vadd.f32 %v2765_v31, %v399_v3  ;;  %v435_v35 = vld [vmem:[#allocation2 + $0x190] sm:$0xff]  ;;  %v401_v36 = vld [vmem:[#allocation2 + $0x80] sm:$0xff]  ;;  %v2302_v39 = vpop.f32.mrb[18].mxu0  ;;  %v2334_v40 = vpop.f32.mrb[18].mxu1  ;;  %v1510_v41 = vsel %vm1382_vm7, %v1318_v9, %v1446_v57  ;;  %v1151_v42 = vadd.f32 %v2767_v32, %v431_v12  ;;  %v1117_v5 = vadd.f32 %v2771_v37, %v397_v14 }
 0x11f   : > { %1181 = vst.msk [vmem:[#allocation2 + $0x58] sm:$0xff] %vm320_vm0, %v1116_v19  ;;  %v1149_v7 = vadd.f32 %v2773_v38, %v429_v15  ;;  %v433_v13 = vld [vmem:[#allocation2 + $0x180] sm:$0xff]  ;;  %v404_v43 = vld [vmem:[#allocation2 + $0x98] sm:$0xff]  ;;  %v917_v44 = vpop.f32.mrb[19].mxu0  ;;  %v1045_v45 = vpop.f32.mrb[19].mxu1  ;;  %v2182_v48 = vpack.c.bf16 %v1510_v41, %v1510_v41  ;;  %1213 = vst.msk [vmem:[#allocation2 + $0x158] sm:$0xff] %vm320_vm0, %v1148_v0  ;;  %v1120_v32 = vadd.f32 %v2784_v46, %v400_v20 }
 0x120   : > { %1826 = vst.msk [vmem:[%s2726_s29 + $0x14] sm:$0xf] %vm1820_vm4, %v2177_v25  ;;  %1858 = vst.msk [vmem:[%s2726_s29 + $0x94] sm:$0xf] %vm1820_vm4, %v2209_v26  ;;  %v436_v31 = vld [vmem:[#allocation2 + $0x198] sm:$0xff]  ;;  %v1152_v37 = vadd.f32 %v2786_v47, %v432_v21  ;;  %v1118_v38 = vadd.f32 %v2789_v56, %v398_v22  ;;  %v402_v49 = vld [vmem:[#allocation2 + $0x88] sm:$0xff]  ;;  %v1150_v52 = vadd.f32 %v2791_v59, %v430_v58 }
 0x121   : > { %1179 = vst.msk [vmem:[#allocation2 + $0x48] sm:$0xff] %vm320_vm0, %v1114_v29  ;;  %1211 = vst.msk [vmem:[#allocation2 + $0x148] sm:$0xff] %vm320_vm0, %v1146_v30  ;;  %v434_v50 = vld [vmem:[#allocation2 + $0x188] sm:$0xff]  ;;  %v1279_v51 = vld [vmem:[#allocation2 + $0x150] sm:$0xff]  ;;  %v1123_v54 = vadd.f32 %v2301_v23, %v403_v34  ;;  %v1155_v55 = vadd.f32 %v2333_v24, %v435_v35  ;;  %v1121_v60 = vadd.f32 %v914_v27, %v401_v36 }
 0x122   : > { %1184 = vst.msk [vmem:[#allocation2 + $0x70] sm:$0xff] %vm320_vm0, %v1119_v33  ;;  %1216 = vst.msk [vmem:[#allocation2 + $0x170] sm:$0xff] %vm320_vm0, %v1151_v42  ;;  %v1350_v46 = vadd.f32 %v2707_v6, %v1279_v51  ;;  %v1153_v47 = vadd.f32 %v1042_v28, %v433_v13  ;;  %v1124_v56 = vadd.f32 %v2302_v39, %v404_v43  ;;  %v407_v62 = vld [vmem:[#allocation2 + $0xb0] sm:$0xff]  ;;  %v405_v2 = vld [vmem:[#allocation2 + $0xa0] sm:$0xff]  ;;  %v2305_v8 = vpop.f32.mrb[20].mxu0  ;;  %v2337_v14 = vpop.f32.mrb[20].mxu1 }
 0x123   : > { %1182 = vst.msk [vmem:[#allocation2 + $0x60] sm:$0xff] %vm320_vm0, %v1117_v5  ;;  %1214 = vst.msk [vmem:[#allocation2 + $0x160] sm:$0xff] %vm320_vm0, %v1149_v7  ;;  %v1156_v61 = vadd.f32 %v2334_v40, %v436_v31  ;;  %v1122_v59 = vadd.f32 %v917_v44, %v402_v49  ;;  %v1154_v63 = vadd.f32 %v1045_v45, %v434_v50  ;;  %v439_v1 = vld [vmem:[#allocation2 + $0x1b0] sm:$0xff]  ;;  %v930_v15 = vpop.f32.mrb[21].mxu0  ;;  %v437_v20 = vld [vmem:[#allocation2 + $0x1a0] sm:$0xff]  ;;  %v1058_v21 = vpop.f32.mrb[21].mxu1 }
 0x124   : > { %1831 = vst.msk [vmem:[%s2726_s29 + $0x28] sm:$0xf] %vm1820_vm4, %v2182_v48  ;;  %vm1414_vm8 = vcmp.ge.f32.partialorder %v1350_v46, 0.0  ;;  %v1478_v3 = vmul.f32 0.01, %v1350_v46  ;;  %v1245_v53 = vld [vmem:[#allocation2 + $0x40] sm:$0xff]  ;;  %v1127_v12 = vadd.f32 %v2305_v8, %v407_v62  ;;  %v1159_v18 = vadd.f32 %v2337_v14, %v439_v1 }
 0x125   : > { %1185 = vst.msk [vmem:[#allocation2 + $0x78] sm:$0xff] %vm320_vm0, %v1120_v32  ;;  %1217 = vst.msk [vmem:[#allocation2 + $0x178] sm:$0xff] %vm320_vm0, %v1152_v37  ;;  %v1277_v4 = vld [vmem:[#allocation2 + $0x140] sm:$0xff]  ;;  %v1316_v9 = vadd.f32 %v2707_v6, %v1245_v53  ;;  %v1125_v19 = vadd.f32 %v930_v15, %v405_v2  ;;  %v2851_v22 = vpop.f32.mrb[22].mxu0  ;;  %v1157_v34 = vadd.f32 %v1058_v21, %v437_v20  ;;  %v2861_v35 = vpop.f32.mrb[22].mxu1 }
 0x126   : > { %1183 = vst.msk [vmem:[#allocation2 + $0x68] sm:$0xff] %vm320_vm0, %v1118_v38  ;;  %1215 = vst.msk [vmem:[#allocation2 + $0x168] sm:$0xff] %vm320_vm0, %v1150_v52  ;;  %v1348_v10 = vadd.f32 %v2707_v6, %v1277_v4  ;;  %v1248_v11 = vld [vmem:[#allocation2 + $0x58] sm:$0xff]  ;;  %v1542_v16 = vsel %vm1414_vm8, %v1350_v46, %v1478_v3  ;;  %v2863_v36 = vpop.f32.mrb[23].mxu0  ;;  %v2867_v13 = vpop.f32.mrb[23].mxu1 }
 0x127   : > { %1188 = vst.msk [vmem:[#allocation2 + $0x90] sm:$0xff] %vm320_vm0, %v1123_v54  ;;  %1220 = vst.msk [vmem:[#allocation2 + $0x190] sm:$0xff] %vm320_vm0, %v1155_v55  ;;  %v1319_v17 = vadd.f32 %v2707_v6, %v1248_v11  ;;  %v2214_v23 = vpack.c.bf16 %v1542_v16, %v1542_v16  ;;  %vm1380_vm9 = vcmp.ge.f32.partialorder %v1316_v9, 0.0  ;;  %v1444_v24 = vmul.f32 0.01, %v1316_v9  ;;  %v1280_v25 = vld [vmem:[#allocation2 + $0x158] sm:$0xff] }
 0x128   : > { %1186 = vst.msk [vmem:[#allocation2 + $0x80] sm:$0xff] %vm320_vm0, %v1121_v60  ;;  %1218 = vst.msk [vmem:[#allocation2 + $0x180] sm:$0xff] %vm320_vm0, %v1153_v47  ;;  %vm1412_vm10 = vcmp.ge.f32.partialorder %v1348_v10, 0.0  ;;  %v1246_v26 = vld [vmem:[#allocation2 + $0x48] sm:$0xff]  ;;  %v1476_v57 = vmul.f32 0.01, %v1348_v10  ;;  %v1351_v27 = vadd.f32 %v2707_v6, %v1280_v25 }
 0x129   : > { %1189 = vst.msk [vmem:[#allocation2 + $0x98] sm:$0xff] %vm320_vm0, %v1124_v56  ;;  %1221 = vst.msk [vmem:[#allocation2 + $0x198] sm:$0xff] %vm320_vm0, %v1156_v61  ;;  %vm1383_vm11 = vcmp.ge.f32.partialorder %v1319_v17, 0.0  ;;  %v1447_v58 = vmul.f32 0.01, %v1319_v17  ;;  %v1278_v28 = vld [vmem:[#allocation2 + $0x148] sm:$0xff]  ;;  %v1508_v0 = vsel %vm1380_vm9, %v1316_v9, %v1444_v24  ;;  %v1317_v29 = vadd.f32 %v2707_v6, %v1246_v26 }
 0x12a   : > { %1187 = vst.msk [vmem:[#allocation2 + $0x88] sm:$0xff] %vm320_vm0, %v1122_v59  ;;  %1219 = vst.msk [vmem:[#allocation2 + $0x188] sm:$0xff] %vm320_vm0, %v1154_v63  ;;  %v1349_v30 = vadd.f32 %v2707_v6, %v1278_v28  ;;  %v1251_v33 = vld [vmem:[#allocation2 + $0x70] sm:$0xff]  ;;  %v2180_v39 = vpack.c.bf16 %v1508_v0, %v1508_v0  ;;  %v1540_v40 = vsel %vm1412_vm10, %v1348_v10, %v1476_v57  ;;  %vm1415_vm12 = vcmp.ge.f32.partialorder %v1351_v27, 0.0  ;;  %v1249_v5 = vld [vmem:[#allocation2 + $0x60] sm:$0xff]  ;;  %v2881_v51 = vpop.f32.mrb[24].mxu0 }
 0x12b   : > { %1192 = vst.msk [vmem:[#allocation2 + $0xb0] sm:$0xff] %vm320_vm0, %v1127_v12  ;;  %1224 = vst.msk [vmem:[#allocation2 + $0x1b0] sm:$0xff] %vm320_vm0, %v1159_v18  ;;  %v1511_v41 = vsel %vm1383_vm11, %v1319_v17, %v1447_v58  ;;  %v1283_v42 = vld [vmem:[#allocation2 + $0x170] sm:$0xff]  ;;  %v1281_v7 = vld [vmem:[#allocation2 + $0x160] sm:$0xff]  ;;  %v2212_v43 = vpack.c.bf16 %v1540_v40, %v1540_v40  ;;  %v1479_v44 = vmul.f32 0.01, %v1351_v27  ;;  %v1322_v32 = vadd.f32 %v2707_v6, %v1251_v33 }
 0x12c   : > { %1190 = vst.msk [vmem:[#allocation2 + $0xa0] sm:$0xff] %vm320_vm0, %v1125_v19  ;;  %v2183_v31 = vpack.c.bf16 %v1511_v41, %v1511_v41  ;;  %vm1381_vm13 = vcmp.ge.f32.partialorder %v1317_v29, 0.0  ;;  %1222 = vst.msk [vmem:[#allocation2 + $0x1a0] sm:$0xff] %vm320_vm0, %v1157_v34  ;;  %v1445_v45 = vmul.f32 0.01, %v1317_v29  ;;  %vm1413_vm14 = vcmp.ge.f32.partialorder %v1349_v30, 0.0 }
 0x12d   : > { %1863 = vst.msk [vmem:[%s2726_s29 + $0xa8] sm:$0xf] %vm1820_vm4, %v2214_v23  ;;  %1829 = vst.msk [vmem:[%s2726_s29 + $0x20] sm:$0xf] %vm1820_vm4, %v2180_v39  ;;  %v1477_v48 = vmul.f32 0.01, %v1349_v30  ;;  %v1543_v37 = vsel %vm1415_vm12, %v1351_v27, %v1479_v44  ;;  %v1354_v38 = vadd.f32 %v2707_v6, %v1283_v42  ;;  %v1320_v49 = vadd.f32 %v2707_v6, %v1249_v5 }
 0x12e   : > { %1861 = vst.msk [vmem:[%s2726_s29 + $0xa0] sm:$0xf] %vm1820_vm4, %v2212_v43  ;;  %1832 = vst.msk [vmem:[%s2726_s29 + $0x2c] sm:$0xf] %vm1820_vm4, %v2183_v31  ;;  %v1352_v50 = vadd.f32 %v2707_v6, %v1281_v7  ;;  %v2883_v52 = vpop.f32.mrb[24].mxu1  ;;  %v2215_v54 = vpack.c.bf16 %v1543_v37, %v1543_v37  ;;  %v1509_v55 = vsel %vm1381_vm13, %v1317_v29, %v1445_v45  ;;  %vm1386_vm15 = vcmp.ge.f32.partialorder %v1322_v32, 0.0 }
 0x12f   : > { %v1541_v60 = vsel %vm1413_vm14, %v1349_v30, %v1477_v48  ;;  %v1252_v46 = vld [vmem:[#allocation2 + $0x78] sm:$0xff]  ;;  %v2886_v56 = vpop.f32.mrb[25].mxu0  ;;  %v2888_v61 = vpop.f32.mrb[25].mxu1  ;;  %v2181_v62 = vpack.c.bf16 %v1509_v55, %v1509_v55  ;;  %v1450_v63 = vmul.f32 0.01, %v1322_v32  ;;  %vm1418_vm1 = vcmp.ge.f32.partialorder %v1354_v38, 0.0 }
 0x130   : > { %v1284_v47 = vld [vmem:[#allocation2 + $0x178] sm:$0xff]  ;;  %v2213_v59 = vpack.c.bf16 %v1541_v60, %v1541_v60  ;;  %v1250_v1 = vld [vmem:[#allocation2 + $0x68] sm:$0xff]  ;;  %1864 = vst.msk [vmem:[%s2726_s29 + $0xac] sm:$0xf] %vm1820_vm4, %v2215_v54  ;;  %v1482_v2 = vmul.f32 0.01, %v1354_v38  ;;  %v1323_v8 = vadd.f32 %v2707_v6, %v1252_v46 }
 0x131   : > { %vm1384_vm2 = vcmp.ge.f32.partialorder %v1320_v49, 0.0  ;;  %v1448_v3 = vmul.f32 0.01, %v1320_v49  ;;  %vm1416_vm3 = vcmp.ge.f32.partialorder %v1352_v50, 0.0  ;;  %1830 = vst.msk [vmem:[%s2726_s29 + $0x24] sm:$0xf] %vm1820_vm4, %v2181_v62  ;;  %v1514_v53 = vsel %vm1386_vm15, %v1322_v32, %v1450_v63 }
 0x132   : > { %1862 = vst.msk [vmem:[%s2726_s29 + $0xa4] sm:$0xf] %vm1820_vm4, %v2213_v59  ;;  %v1480_v4 = vmul.f32 0.01, %v1352_v50  ;;  %v1355_v9 = vadd.f32 %v2707_v6, %v1284_v47  ;;  %v2899_v10 = vpop.f32.mrb[26].mxu0  ;;  %v2901_v11 = vpop.f32.mrb[26].mxu1  ;;  %v2186_v12 = vpack.c.bf16 %v1514_v53, %v1514_v53  ;;  %v1546_v14 = vsel %vm1418_vm1, %v1354_v38, %v1482_v2 }
 0x133   : > { %v1512_v15 = vsel %vm1384_vm2, %v1320_v49, %v1448_v3  ;;  %v1321_v16 = vadd.f32 %v2707_v6, %v1250_v1  ;;  %v1282_v17 = vld [vmem:[#allocation2 + $0x168] sm:$0xff]  ;;  %v1255_v18 = vld [vmem:[#allocation2 + $0x90] sm:$0xff]  ;;  %v2905_v19 = vpop.f32.mrb[27].mxu0  ;;  %v2907_v20 = vpop.f32.mrb[27].mxu1  ;;  %v2218_v21 = vpack.c.bf16 %v1546_v14, %v1546_v14  ;;  %vm1387_vm5 = vcmp.ge.f32.partialorder %v1323_v8, 0.0  ;;  %v1253_v26 = vld [vmem:[#allocation2 + $0x80] sm:$0xff] }
 0x134   : > { %v2184_v23 = vpack.c.bf16 %v1512_v15, %v1512_v15  ;;  %v1544_v24 = vsel %vm1416_vm3, %v1352_v50, %v1480_v4  ;;  %v1287_v25 = vld [vmem:[#allocation2 + $0x190] sm:$0xff]  ;;  %1835 = vst.msk [vmem:[%s2726_s29 + $0x38] sm:$0xf] %vm1820_vm4, %v2186_v12  ;;  %v1451_v58 = vmul.f32 0.01, %v1323_v8  ;;  %vm1419_vm6 = vcmp.ge.f32.partialorder %v1355_v9, 0.0 }
 0x135   : > { %v2216_v57 = vpack.c.bf16 %v1544_v24, %v1544_v24  ;;  %v1483_v27 = vmul.f32 0.01, %v1355_v9  ;;  %v2912_v28 = vpop.f32.mrb[28].mxu0  ;;  %1867 = vst.msk [vmem:[%s2726_s29 + $0xb8] sm:$0xf] %vm1820_vm4, %v2218_v21  ;;  %vm1385_vm7 = vcmp.ge.f32.partialorder %v1321_v16, 0.0  ;;  %v1353_v29 = vadd.f32 %v2707_v6, %v1282_v17 }
 0x136   : > { %1833 = vst.msk [vmem:[%s2726_s29 + $0x30] sm:$0xf] %vm1820_vm4, %v2184_v23  ;;  %v1449_v0 = vmul.f32 0.01, %v1321_v16  ;;  %v1326_v30 = vadd.f32 %v2707_v6, %v1255_v18  ;;  %v2920_v33 = vpop.f32.mrb[28].mxu1  ;;  %v2922_v34 = vpop.f32.mrb[29].mxu0  ;;  %v1515_v39 = vsel %vm1387_vm5, %v1323_v8, %v1451_v58  ;;  %v1358_v41 = vadd.f32 %v2707_v6, %v1287_v25 }
 0x137   : > { %1865 = vst.msk [vmem:[%s2726_s29 + $0xb0] sm:$0xf] %vm1820_vm4, %v2216_v57  ;;  %v1547_v40 = vsel %vm1419_vm6, %v1355_v9, %v1483_v27  ;;  %v1324_v42 = vadd.f32 %v2707_v6, %v1253_v26  ;;  %v2929_v5 = vpop.f32.mrb[29].mxu1  ;;  %v2931_v7 = vpop.f32.mrb[30].mxu0  ;;  %v2187_v43 = vpack.c.bf16 %v1515_v39, %v1515_v39  ;;  %vm1417_vm8 = vcmp.ge.f32.partialorder %v1353_v29, 0.0  ;;  %v1285_v45 = vld [vmem:[#allocation2 + $0x180] sm:$0xff] }
 0x138   : > { %v2219_v31 = vpack.c.bf16 %v1547_v40, %v1547_v40  ;;  %v1513_v44 = vsel %vm1385_vm7, %v1321_v16, %v1449_v0  ;;  %v1256_v48 = vld [vmem:[#allocation2 + $0x98] sm:$0xff]  ;;  %v2933_v32 = vpop.f32.mrb[30].mxu1  ;;  %v2935_v37 = vpop.f32.mrb[31].mxu0  ;;  %v1481_v49 = vmul.f32 0.01, %v1353_v29  ;;  %vm1390_vm9 = vcmp.ge.f32.partialorder %v1326_v30, 0.0 }
 0x139   : > { %v2185_v38 = vpack.c.bf16 %v1513_v44, %v1513_v44  ;;  %v1454_v50 = vmul.f32 0.01, %v1326_v30  ;;  %v2937_v54 = vpop.f32.mrb[31].mxu1  ;;  %1836 = vst.msk [vmem:[%s2726_s29 + $0x3c] sm:$0xf] %vm1820_vm4, %v2187_v43  ;;  %vm1422_vm10 = vcmp.ge.f32.partialorder %v1358_v41, 0.0  ;;  %v1356_v62 = vadd.f32 %v2707_v6, %v1285_v45 }
 0x13a   : > { %1868 = vst.msk [vmem:[%s2726_s29 + $0xbc] sm:$0xf] %vm1820_vm4, %v2219_v31  ;;  %v1486_v55 = vmul.f32 0.01, %v1358_v41  ;;  %vm1388_vm11 = vcmp.ge.f32.partialorder %v1324_v42, 0.0  ;;  %v1545_v46 = vsel %vm1417_vm8, %v1353_v29, %v1481_v49  ;;  %v1327_v59 = vadd.f32 %v2707_v6, %v1256_v48  ;;  %v1288_v63 = vld [vmem:[#allocation2 + $0x198] sm:$0xff] }
 0x13b   : > { %v1452_v60 = vmul.f32 0.01, %v1324_v42  ;;  %1834 = vst.msk [vmem:[%s2726_s29 + $0x34] sm:$0xf] %vm1820_vm4, %v2185_v38  ;;  %v1518_v47 = vsel %vm1390_vm9, %v1326_v30, %v1454_v50  ;;  %v1254_v1 = vld [vmem:[#allocation2 + $0x88] sm:$0xff]  ;;  %v2217_v2 = vpack.c.bf16 %v1545_v46, %v1545_v46  ;;  %v1259_v9 = vld [vmem:[#allocation2 + $0xb0] sm:$0xff]  ;;  %v1359_v18 = vadd.f32 %v2707_v6, %v1288_v63 }
 0x13c   : > { %v2190_v3 = vpack.c.bf16 %v1518_v47, %v1518_v47  ;;  %v1550_v53 = vsel %vm1422_vm10, %v1358_v41, %v1486_v55  ;;  %v1286_v8 = vld [vmem:[#allocation2 + $0x188] sm:$0xff]  ;;  %v1291_v12 = vld [vmem:[#allocation2 + $0x1b0] sm:$0xff]  ;;  %vm1420_vm12 = vcmp.ge.f32.partialorder %v1356_v62, 0.0  ;;  %v1484_v16 = vmul.f32 0.01, %v1356_v62  ;;  %v1257_v30 = vld [vmem:[#allocation2 + $0xa0] sm:$0xff] }
 0x13d   : > { %v1516_v4 = vsel %vm1388_vm11, %v1324_v42, %v1452_v60  ;;  %v2222_v14 = vpack.c.bf16 %v1550_v53, %v1550_v53  ;;  %1866 = vst.msk [vmem:[%s2726_s29 + $0xb4] sm:$0xf] %vm1820_vm4, %v2217_v2  ;;  %vm1391_vm13 = vcmp.ge.f32.partialorder %v1327_v59, 0.0  ;;  %v1455_v17 = vmul.f32 0.01, %v1327_v59  ;;  %v1289_v42 = vld [vmem:[#allocation2 + $0x1a0] sm:$0xff] }
 0x13e   : > { %v2188_v15 = vpack.c.bf16 %v1516_v4, %v1516_v4  ;;  %1839 = vst.msk [vmem:[%s2726_s29 + $0x48] sm:$0xf] %vm1820_vm4, %v2190_v3  ;;  %v1325_v21 = vadd.f32 %v2707_v6, %v1254_v1  ;;  %v1548_v23 = vsel %vm1420_vm12, %v1356_v62, %v1484_v16  ;;  %v1357_v24 = vadd.f32 %v2707_v6, %v1286_v8  ;;  %v408_v45 = vld [vmem:[#allocation2 + $0xb8] sm:$0xff]  ;;  %v406_v60 = vld [vmem:[#allocation2 + $0xa8] sm:$0xff]  ;;  %v411_v1 = vld [vmem:[#allocation2 + $0xd0] sm:$0xff] }
 0x13f   : > { %1871 = vst.msk [vmem:[%s2726_s29 + $0xc8] sm:$0xf] %vm1820_vm4, %v2222_v14  ;;  %v1330_v25 = vadd.f32 %v2707_v6, %v1259_v9  ;;  %v1362_v26 = vadd.f32 %v2707_v6, %v1291_v12  ;;  %v2220_v57 = vpack.c.bf16 %v1548_v23, %v1548_v23  ;;  %v1519_v58 = vsel %vm1391_vm13, %v1327_v59, %v1455_v17  ;;  %v440_v55 = vld [vmem:[#allocation2 + $0x1b8] sm:$0xff]  ;;  %v438_v46 = vld [vmem:[#allocation2 + $0x1a8] sm:$0xff]  ;;  %v443_v2 = vld [vmem:[#allocation2 + $0x1d0] sm:$0xff] }
 0x140   : > { %1837 = vst.msk [vmem:[%s2726_s29 + $0x40] sm:$0xf] %vm1820_vm4, %v2188_v15  ;;  %vm1423_vm14 = vcmp.ge.f32.partialorder %v1359_v18, 0.0  ;;  %v1487_v27 = vmul.f32 0.01, %v1359_v18  ;;  %v2191_v0 = vpack.c.bf16 %v1519_v58, %v1519_v58  ;;  %vm1389_vm15 = vcmp.ge.f32.partialorder %v1325_v21, 0.0 }
 0x141   : > { %v1453_v29 = vmul.f32 0.01, %v1325_v21  ;;  %vm1421_vm1 = vcmp.ge.f32.partialorder %v1357_v24, 0.0  ;;  %1869 = vst.msk [vmem:[%s2726_s29 + $0xc0] sm:$0xf] %vm1820_vm4, %v2220_v57  ;;  %vm1394_vm2 = vcmp.ge.f32.partialorder %v1330_v25, 0.0  ;;  %v1328_v50 = vadd.f32 %v2707_v6, %v1257_v30 }
 0x142   : > { %v1551_v39 = vsel %vm1423_vm14, %v1359_v18, %v1487_v27  ;;  %v1485_v40 = vmul.f32 0.01, %v1357_v24  ;;  %v1458_v41 = vmul.f32 0.01, %v1330_v25  ;;  %1840 = vst.msk [vmem:[%s2726_s29 + $0x4c] sm:$0xf] %vm1820_vm4, %v2191_v0  ;;  %v1360_v63 = vadd.f32 %v2707_v6, %v1289_v42 }
 0x143   : > { %v2223_v43 = vpack.c.bf16 %v1551_v39, %v1551_v39  ;;  %v1517_v31 = vsel %vm1389_vm15, %v1325_v21, %v1453_v29  ;;  %vm1426_vm3 = vcmp.ge.f32.partialorder %v1362_v26, 0.0  ;;  %v1490_v44 = vmul.f32 0.01, %v1362_v26  ;;  %v409_v3 = vld [vmem:[#allocation2 + $0xc0] sm:$0xff]  ;;  %v412_v12 = vld [vmem:[#allocation2 + $0xd8] sm:$0xff]  ;;  %v410_v17 = vld [vmem:[#allocation2 + $0xc8] sm:$0xff] }
 0x144   : > { %v2189_v48 = vpack.c.bf16 %v1517_v31, %v1517_v31  ;;  %v1549_v38 = vsel %vm1421_vm1, %v1357_v24, %v1485_v40  ;;  %v1522_v49 = vsel %vm1394_vm2, %v1330_v25, %v1458_v41  ;;  %vm1392_vm5 = vcmp.ge.f32.partialorder %v1328_v50, 0.0  ;;  %v441_v9 = vld [vmem:[#allocation2 + $0x1c0] sm:$0xff]  ;;  %v444_v14 = vld [vmem:[#allocation2 + $0x1d8] sm:$0xff]  ;;  %v442_v18 = vld [vmem:[#allocation2 + $0x1c8] sm:$0xff] }
 0x145   : > { %1872 = vst.msk [vmem:[%s2726_s29 + $0xcc] sm:$0xf] %vm1820_vm4, %v2223_v43  ;;  %v2221_v47 = vpack.c.bf16 %v1549_v38, %v1549_v38  ;;  %v2194_v62 = vpack.c.bf16 %v1522_v49, %v1522_v49  ;;  %v1554_v59 = vsel %vm1426_vm3, %v1362_v26, %v1490_v44  ;;  %v1456_v4 = vmul.f32 0.01, %v1328_v50  ;;  %v415_v21 = vld [vmem:[#allocation2 + $0xf0] sm:$0xff]  ;;  %v413_v57 = vld [vmem:[#allocation2 + $0xe0] sm:$0xff] }
 0x146   : > { %1838 = vst.msk [vmem:[%s2726_s29 + $0x44] sm:$0xf] %vm1820_vm4, %v2189_v48  ;;  %v2226_v53 = vpack.c.bf16 %v1554_v59, %v1554_v59  ;;  %v1128_v8 = vadd.f32 %v2851_v22, %v408_v45  ;;  %vm1424_vm6 = vcmp.ge.f32.partialorder %v1360_v63, 0.0  ;;  %v1488_v6 = vmul.f32 0.01, %v1360_v63  ;;  %v447_v26 = vld [vmem:[#allocation2 + $0x1f0] sm:$0xff] }
 0x147   : > { %1870 = vst.msk [vmem:[%s2726_s29 + $0xc4] sm:$0xf] %vm1820_vm4, %v2221_v47  ;;  %1843 = vst.msk [vmem:[%s2726_s29 + $0x58] sm:$0xf] %vm1820_vm4, %v2194_v62  ;;  %v1160_v15 = vadd.f32 %v2861_v35, %v440_v55  ;;  %v1126_v16 = vadd.f32 %v2863_v36, %v406_v60  ;;  %v1520_v22 = vsel %vm1392_vm5, %v1328_v50, %v1456_v4  ;;  %v445_v35 = vld [vmem:[#allocation2 + $0x1e0] sm:$0xff]  ;;  %v448_v29 = vld [vmem:[#allocation2 + $0x1f8] sm:$0xff] }
 0x148   : > { %1875 = vst.msk [vmem:[%s2726_s29 + $0xd8] sm:$0xf] %vm1820_vm4, %v2226_v53  ;;  %v1158_v23 = vadd.f32 %v2867_v13, %v438_v46  ;;  %v1131_v24 = vadd.f32 %v2881_v51, %v411_v1  ;;  %v1163_v25 = vadd.f32 %v2883_v52, %v443_v2  ;;  %v2192_v58 = vpack.c.bf16 %v1520_v22, %v1520_v22  ;;  %v416_v13 = vld [vmem:[#allocation2 + $0xf8] sm:$0xff]  ;;  %v414_v51 = vld [vmem:[#allocation2 + $0xe8] sm:$0xff] }
 0x149   : > { %1193 = vst.msk [vmem:[#allocation2 + $0xb8] sm:$0xff] %vm320_vm0, %v1128_v8  ;;  %v1552_v36 = vsel %vm1424_vm6, %v1360_v63, %v1488_v6  ;;  %1225 = vst.msk [vmem:[#allocation2 + $0x1b8] sm:$0xff] %vm320_vm0, %v1160_v15  ;;  %v1129_v27 = vadd.f32 %v2886_v56, %v409_v3  ;;  %v1161_v0 = vadd.f32 %v2888_v61, %v441_v9  ;;  %v446_v56 = vld [vmem:[#allocation2 + $0x1e8] sm:$0xff] }
 0x14a   : > { %1191 = vst.msk [vmem:[#allocation2 + $0xa8] sm:$0xff] %vm320_vm0, %v1126_v16  ;;  %v2224_v52 = vpack.c.bf16 %v1552_v36, %v1552_v36  ;;  %1223 = vst.msk [vmem:[#allocation2 + $0x1a8] sm:$0xff] %vm320_vm0, %v1158_v23  ;;  %v1132_v30 = vadd.f32 %v2899_v10, %v412_v12  ;;  %v1164_v39 = vadd.f32 %v2901_v11, %v444_v14 }
 0x14b   : > { %1196 = vst.msk [vmem:[#allocation2 + $0xd0] sm:$0xff] %vm320_vm0, %v1131_v24  ;;  %1228 = vst.msk [vmem:[#allocation2 + $0x1d0] sm:$0xff] %vm320_vm0, %v1163_v25  ;;  %v1130_v40 = vadd.f32 %v2905_v19, %v410_v17  ;;  %v1162_v61 = vadd.f32 %v2907_v20, %v442_v18  ;;  %v1135_v41 = vadd.f32 %v2912_v28, %v415_v21 }
 0x14c   : > { %1841 = vst.msk [vmem:[%s2726_s29 + $0x50] sm:$0xf] %vm1820_vm4, %v2192_v58  ;;  %v1167_v42 = vadd.f32 %v2920_v33, %v447_v26  ;;  %v1133_v43 = vadd.f32 %v2922_v34, %v413_v57  ;;  %1873 = vst.msk [vmem:[%s2726_s29 + $0xd0] sm:$0xf] %vm1820_vm4, %v2224_v52  ;;  %v1165_v10 = vadd.f32 %v2929_v5, %v445_v35  ;;  %v3024_v34 = vld [vmem:[%s2700_s26] ss:$0 sm:$0xff] }
 0x14d   : > { %1194 = vst.msk [vmem:[#allocation2 + $0xc0] sm:$0xff] %vm320_vm0, %v1129_v27  ;;  %1226 = vst.msk [vmem:[#allocation2 + $0x1c0] sm:$0xff] %vm320_vm0, %v1161_v0  ;;  %v1136_v11 = vadd.f32 %v2931_v7, %v416_v13  ;;  %v1168_v19 = vadd.f32 %v2933_v32, %v448_v29  ;;  %v1134_v20 = vadd.f32 %v2935_v37, %v414_v51 }
 0x14e   : > { %1197 = vst.msk [vmem:[#allocation2 + $0xd8] sm:$0xff] %vm320_vm0, %v1132_v30  ;;  %1229 = vst.msk [vmem:[#allocation2 + $0x1d8] sm:$0xff] %vm320_vm0, %v1164_v39  ;;  %v1166_v28 = vadd.f32 %v2937_v54, %v446_v56 }
 0x14f   : > { %1195 = vst.msk [vmem:[#allocation2 + $0xc8] sm:$0xff] %vm320_vm0, %v1130_v40  ;;  %1227 = vst.msk [vmem:[#allocation2 + $0x1c8] sm:$0xff] %vm320_vm0, %v1162_v61 }
 0x150   : > { %1200 = vst.msk [vmem:[#allocation2 + $0xf0] sm:$0xff] %vm320_vm0, %v1135_v41  ;;  %1232 = vst.msk [vmem:[#allocation2 + $0x1f0] sm:$0xff] %vm320_vm0, %v1167_v42  ;;  %v1260_v33 = vld [vmem:[#allocation2 + $0xb8] sm:$0xff] }
 0x151   : > { %1198 = vst.msk [vmem:[#allocation2 + $0xe0] sm:$0xff] %vm320_vm0, %v1133_v43  ;;  %1230 = vst.msk [vmem:[#allocation2 + $0x1e0] sm:$0xff] %vm320_vm0, %v1165_v10  ;;  %v1331_v5 = vadd.f32 %v3024_v34, %v1260_v33  ;;  %v1292_v7 = vld [vmem:[#allocation2 + $0x1b8] sm:$0xff]  ;;  %v1258_v32 = vld [vmem:[#allocation2 + $0xa8] sm:$0xff] }
 0x152   : > { %1201 = vst.msk [vmem:[#allocation2 + $0xf8] sm:$0xff] %vm320_vm0, %v1136_v11  ;;  %1233 = vst.msk [vmem:[#allocation2 + $0x1f8] sm:$0xff] %vm320_vm0, %v1168_v19  ;;  %v1363_v37 = vadd.f32 %v3024_v34, %v1292_v7  ;;  %v1329_v54 = vadd.f32 %v3024_v34, %v1258_v32  ;;  %v1290_v31 = vld [vmem:[#allocation2 + $0x1a8] sm:$0xff]  ;;  %v1263_v44 = vld [vmem:[#allocation2 + $0xd0] sm:$0xff] }
 0x153   : > { %1199 = vst.msk [vmem:[#allocation2 + $0xe8] sm:$0xff] %vm320_vm0, %v1134_v20  ;;  %1231 = vst.msk [vmem:[#allocation2 + $0x1e8] sm:$0xff] %vm320_vm0, %v1166_v28  ;;  %vm1395_vm7 = vcmp.ge.f32.partialorder %v1331_v5, 0.0  ;;  %v1459_v45 = vmul.f32 0.01, %v1331_v5  ;;  %v1361_v48 = vadd.f32 %v3024_v34, %v1290_v31  ;;  %v1334_v38 = vadd.f32 %v3024_v34, %v1263_v44  ;;  %v1295_v49 = vld [vmem:[#allocation2 + $0x1d0] sm:$0xff] }
 0x154   : > { %vm1427_vm0 = vcmp.ge.f32.partialorder %v1363_v37, 0.0  ;;  %v1491_v50 = vmul.f32 0.01, %v1363_v37  ;;  %vm1393_vm8 = vcmp.ge.f32.partialorder %v1329_v54, 0.0  ;;  %v1457_v55 = vmul.f32 0.01, %v1329_v54 }
 0x155   : > { %v1523_v60 = vsel %vm1395_vm7, %v1331_v5, %v1459_v45  ;;  %vm1425_vm9 = vcmp.ge.f32.partialorder %v1361_v48, 0.0  ;;  %v1489_v46 = vmul.f32 0.01, %v1361_v48  ;;  %vm1398_vm10 = vcmp.ge.f32.partialorder %v1334_v38, 0.0  ;;  %v1261_v47 = vld [vmem:[#allocation2 + $0xc0] sm:$0xff]  ;;  %v1264_v3 = vld [vmem:[#allocation2 + $0xd8] sm:$0xff] }
 0x156   : > { %v1293_v62 = vld [vmem:[#allocation2 + $0x1c0] sm:$0xff]  ;;  %v2195_v59 = vpack.c.bf16 %v1523_v60, %v1523_v60  ;;  %v1555_v63 = vsel %vm1427_vm0, %v1363_v37, %v1491_v50  ;;  %v1521_v1 = vsel %vm1393_vm8, %v1329_v54, %v1457_v55  ;;  %v1462_v2 = vmul.f32 0.01, %v1334_v38  ;;  %v1296_v16 = vld [vmem:[#allocation2 + $0x1d8] sm:$0xff]  ;;  %v1262_v22 = vld [vmem:[#allocation2 + $0xc8] sm:$0xff] }
 0x157   : > { %v2227_v53 = vpack.c.bf16 %v1555_v63, %v1555_v63  ;;  %v2193_v4 = vpack.c.bf16 %v1521_v1, %v1521_v1  ;;  %v1553_v8 = vsel %vm1425_vm9, %v1361_v48, %v1489_v46  ;;  %v1366_v9 = vadd.f32 %v3024_v34, %v1295_v49  ;;  %v1294_v35 = vld [vmem:[#allocation2 + $0x1c8] sm:$0xff]  ;;  %v1267_v13 = vld [vmem:[#allocation2 + $0xf0] sm:$0xff] }
 0x158   : > { %1844 = vst.msk [vmem:[%s2726_s29 + $0x5c] sm:$0xf] %vm1820_vm4, %v2195_v59  ;;  %v2225_v12 = vpack.c.bf16 %v1553_v8, %v1553_v8  ;;  %v1526_v14 = vsel %vm1398_vm10, %v1334_v38, %v1462_v2  ;;  %v1332_v6 = vadd.f32 %v3024_v34, %v1261_v47  ;;  %v1364_v15 = vadd.f32 %v3024_v34, %v1293_v62  ;;  %v1299_v29 = vld [vmem:[#allocation2 + $0x1f0] sm:$0xff]  ;;  %v1265_v51 = vld [vmem:[#allocation2 + $0xe0] sm:$0xff] }
 0x159   : > { %1876 = vst.msk [vmem:[%s2726_s29 + $0xdc] sm:$0xf] %vm1820_vm4, %v2227_v53  ;;  %1842 = vst.msk [vmem:[%s2726_s29 + $0x54] sm:$0xf] %vm1820_vm4, %v2193_v4  ;;  %v2198_v17 = vpack.c.bf16 %v1526_v14, %v1526_v14  ;;  %vm1430_vm11 = vcmp.ge.f32.partialorder %v1366_v9, 0.0  ;;  %v1335_v21 = vadd.f32 %v3024_v34, %v1264_v3  ;;  %v1367_v57 = vadd.f32 %v3024_v34, %v1296_v16  ;;  %v1297_v40 = vld [vmem:[#allocation2 + $0x1e0] sm:$0xff] }
 0x15a   : > { %v1494_v18 = vmul.f32 0.01, %v1366_v9  ;;  %1874 = vst.msk [vmem:[%s2726_s29 + $0xd4] sm:$0xf] %vm1820_vm4, %v2225_v12  ;;  %vm1396_vm12 = vcmp.ge.f32.partialorder %v1332_v6, 0.0  ;;  %vm1428_vm13 = vcmp.ge.f32.partialorder %v1364_v15, 0.0  ;;  %v1333_v0 = vadd.f32 %v3024_v34, %v1262_v22 }
 0x15b   : > { %v1460_v23 = vmul.f32 0.01, %v1332_v6  ;;  %v1492_v24 = vmul.f32 0.01, %v1364_v15  ;;  %1847 = vst.msk [vmem:[%s2726_s29 + $0x68] sm:$0xf] %vm1820_vm4, %v2198_v17  ;;  %v1365_v43 = vadd.f32 %v3024_v34, %v1294_v35  ;;  %v1338_v10 = vadd.f32 %v3024_v34, %v1267_v13 }
 0x15c   : > { %v1558_v25 = vsel %vm1430_vm11, %v1366_v9, %v1494_v18  ;;  %vm1399_vm14 = vcmp.ge.f32.partialorder %v1335_v21, 0.0  ;;  %v1463_v26 = vmul.f32 0.01, %v1335_v21  ;;  %vm1431_vm15 = vcmp.ge.f32.partialorder %v1367_v57, 0.0  ;;  %v1268_v56 = vld [vmem:[#allocation2 + $0xf8] sm:$0xff]  ;;  %v1266_v60 = vld [vmem:[#allocation2 + $0xe8] sm:$0xff] }
 0x15d   : > { %v2230_v58 = vpack.c.bf16 %v1558_v25, %v1558_v25  ;;  %v1524_v36 = vsel %vm1396_vm12, %v1332_v6, %v1460_v23  ;;  %v1556_v27 = vsel %vm1428_vm13, %v1364_v15, %v1492_v24  ;;  %v1495_v41 = vmul.f32 0.01, %v1367_v57  ;;  %v1300_v48 = vld [vmem:[#allocation2 + $0x1f8] sm:$0xff]  ;;  %v1298_v46 = vld [vmem:[#allocation2 + $0x1e8] sm:$0xff] }
 0x15e   : > { %v2196_v52 = vpack.c.bf16 %v1524_v36, %v1524_v36  ;;  %v2228_v30 = vpack.c.bf16 %v1556_v27, %v1556_v27  ;;  %v1527_v39 = vsel %vm1399_vm14, %v1335_v21, %v1463_v26  ;;  %vm1397_vm1 = vcmp.ge.f32.partialorder %v1333_v0, 0.0 }
 0x15f   : > { %1879 = vst.msk [vmem:[%s2726_s29 + $0xe8] sm:$0xf] %vm1820_vm4, %v2230_v58  ;;  %v2199_v61 = vpack.c.bf16 %v1527_v39, %v1527_v39  ;;  %v1461_v42 = vmul.f32 0.01, %v1333_v0  ;;  %v1370_v11 = vadd.f32 %v3024_v34, %v1299_v29  ;;  %v1336_v19 = vadd.f32 %v3024_v34, %v1265_v51 }
 0x160   : > { %1845 = vst.msk [vmem:[%s2726_s29 + $0x60] sm:$0xf] %vm1820_vm4, %v2196_v52  ;;  %1877 = vst.msk [vmem:[%s2726_s29 + $0xe0] sm:$0xf] %vm1820_vm4, %v2228_v30  ;;  %v1559_v20 = vsel %vm1431_vm15, %v1367_v57, %v1495_v41  ;;  %v1368_v33 = vadd.f32 %v3024_v34, %v1297_v40  ;;  %v1339_v5 = vadd.f32 %v3024_v34, %v1268_v56  ;;  %vm1429_vm2 = vcmp.ge.f32.partialorder %v1365_v43, 0.0 }
 0x161   : > { %1848 = vst.msk [vmem:[%s2726_s29 + $0x6c] sm:$0xf] %vm1820_vm4, %v2199_v61  ;;  %v1525_v28 = vsel %vm1397_vm1, %v1333_v0, %v1461_v42  ;;  %v2231_v7 = vpack.c.bf16 %v1559_v20, %v1559_v20  ;;  %v1493_v37 = vmul.f32 0.01, %v1365_v43  ;;  %vm1402_vm3 = vcmp.ge.f32.partialorder %v1338_v10, 0.0 }
 0x162   : > { %v2197_v32 = vpack.c.bf16 %v1525_v28, %v1525_v28  ;;  %v1466_v54 = vmul.f32 0.01, %v1338_v10  ;;  %vm1434_vm5 = vcmp.ge.f32.partialorder %v1370_v11, 0.0  ;;  %v1498_v31 = vmul.f32 0.01, %v1370_v11 }
 0x163   : > { %1880 = vst.msk [vmem:[%s2726_s29 + $0xec] sm:$0xf] %vm1820_vm4, %v2231_v7  ;;  %v1557_v44 = vsel %vm1429_vm2, %v1365_v43, %v1493_v37  ;;  %vm1400_vm6 = vcmp.ge.f32.partialorder %v1336_v19, 0.0  ;;  %v1464_v45 = vmul.f32 0.01, %v1336_v19  ;;  %vm1432_vm7 = vcmp.ge.f32.partialorder %v1368_v33, 0.0 }
 0x164   : > { %1846 = vst.msk [vmem:[%s2726_s29 + $0x64] sm:$0xf] %vm1820_vm4, %v2197_v32  ;;  %v2229_v38 = vpack.c.bf16 %v1557_v44, %v1557_v44  ;;  %v1530_v49 = vsel %vm1402_vm3, %v1338_v10, %v1466_v54  ;;  %v1562_v50 = vsel %vm1434_vm5, %v1370_v11, %v1498_v31  ;;  %v1496_v55 = vmul.f32 0.01, %v1368_v33 }
 0x165   : > { %v2202_v47 = vpack.c.bf16 %v1530_v49, %v1530_v49  ;;  %v2234_v62 = vpack.c.bf16 %v1562_v50, %v1562_v50  ;;  %v1528_v59 = vsel %vm1400_vm6, %v1336_v19, %v1464_v45  ;;  %vm1403_vm0 = vcmp.ge.f32.partialorder %v1339_v5, 0.0 }
 0x166   : > { %1878 = vst.msk [vmem:[%s2726_s29 + $0xe4] sm:$0xf] %vm1820_vm4, %v2229_v38  ;;  %v2200_v63 = vpack.c.bf16 %v1528_v59, %v1528_v59  ;;  %v1560_v1 = vsel %vm1432_vm7, %v1368_v33, %v1496_v55  ;;  %v1467_v2 = vmul.f32 0.01, %v1339_v5  ;;  %v1371_v3 = vadd.f32 %v3024_v34, %v1300_v48 }
 0x167   : > { %1851 = vst.msk [vmem:[%s2726_s29 + $0x78] sm:$0xf] %vm1820_vm4, %v2202_v47  ;;  %1883 = vst.msk [vmem:[%s2726_s29 + $0xf8] sm:$0xf] %vm1820_vm4, %v2234_v62  ;;  %v2232_v53 = vpack.c.bf16 %v1560_v1, %v1560_v1  ;;  %v1337_v4 = vadd.f32 %v3024_v34, %v1266_v60  ;;  %v1369_v8 = vadd.f32 %v3024_v34, %v1298_v46 }
 0x168   : > { %1849 = vst.msk [vmem:[%s2726_s29 + $0x70] sm:$0xf] %vm1820_vm4, %v2200_v63  ;;  %v1531_v9 = vsel %vm1403_vm0, %v1339_v5, %v1467_v2  ;;  %vm1435_vm8 = vcmp.ge.f32.partialorder %v1371_v3, 0.0  ;;  %v1499_v12 = vmul.f32 0.01, %v1371_v3 }
 0x169   : > { %1881 = vst.msk [vmem:[%s2726_s29 + $0xf0] sm:$0xf] %vm1820_vm4, %v2232_v53  ;;  %v2203_v14 = vpack.c.bf16 %v1531_v9, %v1531_v9  ;;  %vm1401_vm9 = vcmp.ge.f32.partialorder %v1337_v4, 0.0  ;;  %v1465_v6 = vmul.f32 0.01, %v1337_v4  ;;  %vm1433_vm10 = vcmp.ge.f32.partialorder %v1369_v8, 0.0 }
 0x16a   : > { %v1563_v15 = vsel %vm1435_vm8, %v1371_v3, %v1499_v12  ;;  %v1497_v16 = vmul.f32 0.01, %v1369_v8 }
 0x16b   : > { %1852 = vst.msk [vmem:[%s2726_s29 + $0x7c] sm:$0xf] %vm1820_vm4, %v2203_v14  ;;  %v2235_v17 = vpack.c.bf16 %v1563_v15, %v1563_v15  ;;  %v1529_v34 = vsel %vm1401_vm9, %v1337_v4, %v1465_v6 }
 0x16c   : > { %v2201_v18 = vpack.c.bf16 %v1529_v34, %v1529_v34  ;;  %v1561_v21 = vsel %vm1433_vm10, %v1369_v8, %v1497_v16 }
 0x16d   : > { %1884 = vst.msk [vmem:[%s2726_s29 + $0xfc] sm:$0xf] %vm1820_vm4, %v2235_v17  ;;  %v2233_v22 = vpack.c.bf16 %v1561_v21, %v1561_v21 }
 0x16e   : > { %1850 = vst.msk [vmem:[%s2726_s29 + $0x74] sm:$0xf] %vm1820_vm4, %v2201_v18 }
 0x16f   : > { %1882 = vst.msk [vmem:[%s2726_s29 + $0xf4] sm:$0xf] %vm1820_vm4, %v2233_v22 }
 0x170 PF: > { %s13_s14 = sadd.s32 1, %s2444_s14   ;;  %s3099_s12 = smov %s2440_s13 }
 0x171   : > { %p10_p5 = scmp.ge.s32.totalorder %s13_s14, 4   ;;  %s3100_s13 = smov %s3102_s15 }
 0x173   :  { %12 = sbr.rel (!%p10_p5) target bundleno = 2 (0x2), region = 76 }

// kernel: codis_forward.4
= control target key start
LH: loop header
LB: loop body
LE: loop exit
PB: predicated region body
PF: predicated region fallthrough
CT: control target
= control target key end

     0   :  { %s1241_s12 = smov 0   ;;  %s1243_s13 = smov 0   ;;  %s1437_s0 = inlined_call_operand.vmem [shape: bf16[2,128,200], index: 0, kind: input, shape index: {}]   ;;  %s1438_s1 = inlined_call_operand.vmem [shape: bf16[2,200,16], index: 1, kind: input, shape index: {}]   ;;  %s1439_s2 = inlined_call_operand.vmem [shape: f32[2,1,16], index: 2, kind: input, shape index: {}]   ;;  %s1440_s3 = inlined_call_operand.vmem [shape: bf16[2,128,16], index: 3, kind: output, shape index: {}]  }
   0x1   :  { %s1245_s14 = smov 0  }
   0x2 LB: > { %s39_s15 = sadd.s32 1, %s1213_s13  ;;  %p1025_p0 = scmp.ge.s32.totalorder %s1217_s14, 1  ;;  %s1217_s14 = sphi %s1245_s14, %s13_s14   ;;  %s1213_s13 = sphi %s1243_s13, %s1442_s13   ;;  %s1209_s12 = sphi %s1241_s12, %s1441_s12  }
   0x3   : > { %p41_p1 = scmp.ge.s32.totalorder %s39_s15, 2  ;;  %p217_p2 = scmp.lt.s32.totalorder %s1217_s14, 3 }
   0x5   : > { %s1444_s15 = smov (%p41_p1, %s39_s15), 0  ;;  %p218_p3 = pnand %p1025_p0, %p217_p2 }
   0x6   : > { %p277_p4 = scmp.lt.s32.totalorder (!%p218_p3), %s1209_s12, 1  ;;  %vm328_vm0 = vcmask (!%p218_p3), 130048   ;;  %v1219_v0 = vmov (!%p218_p3), 0   ;;  %v1220_v1 = vmov (!%p218_p3), 0.0   ;;  %vm549_vm1 = vcmask (!%p218_p3), 588800  }
   0x7   : > { %221 = sbr.rel (%p218_p3) target bundleno = 328 (0x148), region = 32  ;;  %578 = vmatprep.subr.bf16.mxu0 (!%p218_p3), %v1219_v0  ;;  %1105 = vmatprep.subr.bf16.mxu1 (!%p218_p3), %v1219_v0  ;;  %329 = vst.msk [vmem:[#allocation2] sm:$0xff] (!%p218_p3), %vm328_vm0, %v1220_v1  ;;  %330 = vst.msk [vmem:[#allocation2 + $0x8] sm:$0xff] (!%p218_p3), %vm328_vm0, %v1220_v1  ;;  %vm574_vm2 = vcmask (!%p218_p3), 1043456   ;;  %vm862_vm5 = vcmask (!%p218_p3), 125952  }
   0x8   : > { %331 = vst.msk [vmem:[#allocation2 + $0x10] sm:$0xff] (!%p218_p3), %vm328_vm0, %v1220_v1  ;;  %332 = vst.msk [vmem:[#allocation2 + $0x18] sm:$0xff] (!%p218_p3), %vm328_vm0, %v1220_v1 }
   0x9   : > { %333 = vst.msk [vmem:[#allocation2 + $0x20] sm:$0xff] (!%p218_p3), %vm328_vm0, %v1220_v1  ;;  %334 = vst.msk [vmem:[#allocation2 + $0x28] sm:$0xff] (!%p218_p3), %vm328_vm0, %v1220_v1 }
   0xa   : > { %335 = vst.msk [vmem:[#allocation2 + $0x30] sm:$0xff] (!%p218_p3), %vm328_vm0, %v1220_v1  ;;  %336 = vst.msk [vmem:[#allocation2 + $0x38] sm:$0xff] (!%p218_p3), %vm328_vm0, %v1220_v1 }
   0xb   : > { %337 = vst.msk [vmem:[#allocation2 + $0x40] sm:$0xff] (!%p218_p3), %vm328_vm0, %v1220_v1  ;;  %338 = vst.msk [vmem:[#allocation2 + $0x48] sm:$0xff] (!%p218_p3), %vm328_vm0, %v1220_v1 }
   0xc   : > { %339 = vst.msk [vmem:[#allocation2 + $0x50] sm:$0xff] (!%p218_p3), %vm328_vm0, %v1220_v1  ;;  %340 = vst.msk [vmem:[#allocation2 + $0x58] sm:$0xff] (!%p218_p3), %vm328_vm0, %v1220_v1 }
   0xd   : > { %341 = vst.msk [vmem:[#allocation2 + $0x60] sm:$0xff] (!%p218_p3), %vm328_vm0, %v1220_v1  ;;  %342 = vst.msk [vmem:[#allocation2 + $0x68] sm:$0xff] (!%p218_p3), %vm328_vm0, %v1220_v1 }
   0xe   : > { %s1446_s12 = smov (!%p277_p4, %s1209_s12), 1  ;;  %343 = vst.msk [vmem:[#allocation2 + $0x70] sm:$0xff] %vm328_vm0, %v1220_v1  ;;  %344 = vst.msk [vmem:[#allocation2 + $0x78] sm:$0xff] %vm328_vm0, %v1220_v1  ;;  %v345_v32 = vld [vmem:[#allocation2] sm:$0xff]  ;;  %v346_v36 = vld [vmem:[#allocation2 + $0x8] sm:$0xff] }
   0xf   : > { %s1131_s16 = smul.u32 100, %s1446_s12  ;;  %s1087_s17 = sshll.u32 %s1446_s12, 7  ;;  %v347_v48 = vld [vmem:[#allocation2 + $0x10] sm:$0xff]  ;;  %v348_v53 = vld [vmem:[#allocation2 + $0x18] sm:$0xff] }
  0x10   : > { %s1284_s20 = scalar_lea.vmem %s1437_s0, %s1087_s17  ;;  %s309_s26 = scalar_lea.vmem %s1439_s2, %s1446_s12 }
  0x11   : > { %s1289_s23 = scalar_lea.vmem %s1438_s1, %s1131_s16  ;;  %v1173_v6 = vld [vmem:[%s1284_s20 + $0x4] ss:$8 sps:$4 sm:$0xff]   ;;  %v1171_v18 = vld [vmem:[%s1284_s20] ss:$8 sps:$4 sm:$0xff]   ;;  %v1177_v20 = vld [vmem:[%s1284_s20 + $0x14] ss:$8 sps:$4 sm:$0xff]  }
  0x12   : > { %v1158_v2 = vld [vmem:[%s1289_s23] sm:$0xff]   ;;  %v1159_v3 = vld [vmem:[%s1289_s23 + $0x8] sm:$0xff]   ;;  %v1160_v4 = vld [vmem:[%s1289_s23 + $0x10] sm:$0xff]   ;;  %1060 = vmatprep.mubr.msk.bf16.mxu0 %vm549_vm1, %v1173_v6  ;;  %s1088_s27 = sshll.u32 %s1446_s12, 6 }
  0x13   : > { %579 = vmatpush1.bf16.msra.mxu0 %v1158_v2  ;;  %1118 = vmatpush1.bf16.msra.mxu1 %v1158_v2  ;;  %v1161_v5 = vld [vmem:[%s1289_s23 + $0x18] sm:$0xff]   ;;  %v1162_v7 = vld [vmem:[%s1289_s23 + $0x20] sm:$0xff]   ;;  %v1163_v9 = vld [vmem:[%s1289_s23 + $0x28] sm:$0xff]   ;;  %s1374_s30 = scalar_lea.vmem %s1440_s3, %s1088_s27 }
  0x14   : > { %580 = vmatprep.subr.bf16.mxu0 %v1219_v0  ;;  %1106 = vmatprep.subr.bf16.mxu1 %v1219_v0  ;;  %v1176_v8 = vld [vmem:[%s1284_s20 + $0x44] ss:$8 sps:$4 sm:$0xff]   ;;  %v1164_v10 = vld [vmem:[%s1289_s23 + $0x30] sm:$0xff]   ;;  %v1165_v11 = vld [vmem:[%s1289_s23 + $0x38] sm:$0xff]  }
  0x15   : > { %1064 = vmatprep.mubr.msk.bf16.mxu1 %vm549_vm1, %v1176_v8  ;;  %v1166_v12 = vld [vmem:[%s1289_s23 + $0x40] sm:$0xff]   ;;  %v1167_v13 = vld [vmem:[%s1289_s23 + $0x48] sm:$0xff]   ;;  %v1168_v14 = vld [vmem:[%s1289_s23 + $0x50] sm:$0xff]  }
  0x16   : > { %v1169_v15 = vld [vmem:[%s1289_s23 + $0x58] sm:$0xff]   ;;  %v1170_v16 = vld [vmem:[%s1289_s23 + $0x60] ss:$0 sps:$4 sm:$0xff]   ;;  %v1183_v24 = vld [vmem:[%s1284_s20 + $0x24] ss:$8 sps:$4 sm:$0xff]  }
  0x17   : > { %581 = vmatpush1.bf16.msra.mxu0 %v1159_v3  ;;  %1119 = vmatpush1.bf16.msra.mxu1 %v1159_v3  ;;  %v576_v17 = vsel %vm574_vm2, %v1170_v16, 0  ;;  %v1174_v19 = vld [vmem:[%s1284_s20 + $0x40] ss:$8 sps:$4 sm:$0xff]   ;;  %v1179_v21 = vld [vmem:[%s1284_s20 + $0x54] ss:$8 sps:$4 sm:$0xff]  }
  0x18   : > { %582 = vmatprep.subr.bf16.mxu0 %v1219_v0  ;;  %1107 = vmatprep.subr.bf16.mxu1 %v1219_v0  ;;  %v1181_v22 = vld [vmem:[%s1284_s20 + $0x10] ss:$8 sps:$4 sm:$0xff]   ;;  %v1185_v25 = vld [vmem:[%s1284_s20 + $0x64] ss:$8 sps:$4 sm:$0xff]   ;;  %v1187_v26 = vld [vmem:[%s1284_s20 + $0x20] ss:$8 sps:$4 sm:$0xff]  }
  0x19   : > { %v1182_v23 = vld [vmem:[%s1284_s20 + $0x50] ss:$8 sps:$4 sm:$0xff]   ;;  %v1188_v27 = vld [vmem:[%s1284_s20 + $0x60] ss:$8 sps:$4 sm:$0xff]   ;;  %v1189_v28 = vld [vmem:[%s1284_s20 + $0x34] ss:$8 sps:$4 sm:$0xff]  }
  0x1a   : > { %v1191_v29 = vld [vmem:[%s1284_s20 + $0x74] ss:$8 sps:$4 sm:$0xff]   ;;  %v1193_v30 = vld [vmem:[%s1284_s20 + $0x30] ss:$8 sps:$4 sm:$0xff]   ;;  %v353_v33 = vld [vmem:[#allocation2 + $0x40] sm:$0xff] }
  0x1b   : > { %583 = vmatpush1.bf16.msra.mxu0 %v1160_v4  ;;  %1120 = vmatpush1.bf16.msra.mxu1 %v1160_v4  ;;  %v1194_v31 = vld [vmem:[%s1284_s20 + $0x70] ss:$8 sps:$4 sm:$0xff]   ;;  %v354_v37 = vld [vmem:[#allocation2 + $0x48] sm:$0xff]  ;;  %v1360_v50 = vld [vmem:[%s309_s26] ss:$0 sm:$0xff] }
  0x1c   : > { %584 = vmatprep.subr.bf16.mxu0 %v1219_v0  ;;  %1108 = vmatprep.subr.bf16.mxu1 %v1219_v0  ;;  %v355_v49 = vld [vmem:[#allocation2 + $0x50] sm:$0xff]  ;;  %v356_v54 = vld [vmem:[#allocation2 + $0x58] sm:$0xff] }
  0x1f   : > { %585 = vmatpush1.bf16.msra.mxu0 %v1161_v5  ;;  %1121 = vmatpush1.bf16.msra.mxu1 %v1161_v5 }
  0x20   : > { %586 = vmatprep.subr.bf16.mxu0 %v1219_v0  ;;  %1109 = vmatprep.subr.bf16.mxu1 %v1219_v0 }
  0x23   : > { %587 = vmatpush1.bf16.msra.mxu0 %v1162_v7  ;;  %1122 = vmatpush1.bf16.msra.mxu1 %v1162_v7 }
  0x24   : > { %588 = vmatprep.subr.bf16.mxu0 %v1219_v0  ;;  %1110 = vmatprep.subr.bf16.mxu1 %v1219_v0 }
  0x27   : > { %589 = vmatpush1.bf16.msra.mxu0 %v1163_v9  ;;  %1123 = vmatpush1.bf16.msra.mxu1 %v1163_v9 }
  0x28   : > { %590 = vmatprep.subr.bf16.mxu0 %v1219_v0  ;;  %1111 = vmatprep.subr.bf16.mxu1 %v1219_v0 }
  0x2b   : > { %591 = vmatpush1.bf16.msra.mxu0 %v1164_v10  ;;  %1124 = vmatpush1.bf16.msra.mxu1 %v1164_v10 }
  0x2c   : > { %592 = vmatprep.subr.bf16.mxu0 %v1219_v0  ;;  %1112 = vmatprep.subr.bf16.mxu1 %v1219_v0 }
  0x2f   : > { %593 = vmatpush1.bf16.msra.mxu0 %v1165_v11  ;;  %1125 = vmatpush1.bf16.msra.mxu1 %v1165_v11  ;;  %v349_v11 = vld [vmem:[#allocation2 + $0x20] sm:$0xff] }
  0x30   : > { %594 = vmatprep.subr.bf16.mxu0 %v1219_v0  ;;  %1113 = vmatprep.subr.bf16.mxu1 %v1219_v0 }
  0x33   : > { %595 = vmatpush1.bf16.msra.mxu0 %v1166_v12  ;;  %1126 = vmatpush1.bf16.msra.mxu1 %v1166_v12  ;;  %v357_v12 = vld [vmem:[#allocation2 + $0x60] sm:$0xff] }
  0x34   : > { %596 = vmatprep.subr.bf16.mxu0 %v1219_v0  ;;  %1114 = vmatprep.subr.bf16.mxu1 %v1219_v0 }
  0x37   : > { %597 = vmatpush1.bf16.msra.mxu0 %v1167_v13  ;;  %1127 = vmatpush1.bf16.msra.mxu1 %v1167_v13 }
  0x38   : > { %598 = vmatprep.subr.bf16.mxu0 %v1219_v0  ;;  %1115 = vmatprep.subr.bf16.mxu1 %v1219_v0 }
  0x3b   : > { %599 = vmatpush1.bf16.msra.mxu0 %v1168_v14  ;;  %1128 = vmatpush1.bf16.msra.mxu1 %v1168_v14 }
  0x3c   : > { %600 = vmatprep.subr.bf16.mxu0 %v1219_v0  ;;  %1116 = vmatprep.subr.bf16.mxu1 %v1219_v0 }
  0x3f   : > { %601 = vmatpush1.bf16.msra.mxu0 %v1169_v15  ;;  %1129 = vmatpush1.bf16.msra.mxu1 %v1169_v15 }
  0x40   : > { %602 = vmatprep.subr.bf16.mxu0 %v1219_v0  ;;  %1117 = vmatprep.subr.bf16.mxu1 %v1219_v0 }
  0x43   : > { %603 = vmatpush1.bf16.msra.mxu0 %v576_v17  ;;  %1130 = vmatpush1.bf16.msra.mxu1 %v576_v17 }
  0x46   : > { %611 = vmatmul.mubr.bf16.vlgmr.msra.gmra.mrb[0].mxu0 %v1171_v18  ;;  %643 = vmatmul.mubr.bf16.vlgmr.msra.gmra.mrb[0].mxu1 %v1174_v19 }
  0x47   : > { %1061 = vmatprep.mubr.msk.bf16.mxu0 %vm549_vm1, %v1177_v20  ;;  %1065 = vmatprep.mubr.msk.bf16.mxu1 %vm549_vm1, %v1179_v21  ;;  %v350_v20 = vld [vmem:[#allocation2 + $0x28] sm:$0xff] }
  0x4e   : > { %619 = vmatmul.mubr.bf16.gmra.mrb[4].mxu0 %v1181_v22  ;;  %651 = vmatmul.mubr.bf16.gmra.mrb[4].mxu1 %v1182_v23 }
  0x4f   : > { %1062 = vmatprep.mubr.msk.bf16.mxu0 %vm549_vm1, %v1183_v24  ;;  %1066 = vmatprep.mubr.msk.bf16.mxu1 %vm549_vm1, %v1185_v25 }
  0x56   : > { %627 = vmatmul.mubr.bf16.gmra.mrb[8].mxu0 %v1187_v26  ;;  %659 = vmatmul.mubr.bf16.gmra.mrb[8].mxu1 %v1188_v27  ;;  %v358_v26 = vld [vmem:[#allocation2 + $0x68] sm:$0xff] }
  0x57   : > { %1063 = vmatprep.mubr.msk.bf16.mxu0 %vm549_vm1, %v1189_v28  ;;  %1067 = vmatprep.mubr.msk.bf16.mxu1 %vm549_vm1, %v1191_v29 }
  0x5e   : > { %635 = vmatmul.mubr.bf16.gmra.mrb[12].mxu0 %v1193_v30  ;;  %667 = vmatmul.mubr.bf16.gmra.mrb[12].mxu1 %v1194_v31 }
 0x119   : > { %v612_v34 = vpop.f32.mrb[0].mxu0  ;;  %v644_v35 = vpop.f32.mrb[0].mxu1 }
 0x11a   : > { %v675_v38 = vadd.f32 %v612_v34, %v345_v32  ;;  %v683_v39 = vadd.f32 %v644_v35, %v353_v33  ;;  %v614_v40 = vpop.f32.mrb[1].mxu0  ;;  %v646_v41 = vpop.f32.mrb[1].mxu1 }
 0x11b   : > { %v615_v42 = vpop.f32.mrb[2].mxu0  ;;  %v647_v43 = vpop.f32.mrb[2].mxu1 }
 0x11c   : > { %692 = vst.msk [vmem:[#allocation2] sm:$0xff] %vm328_vm0, %v675_v38  ;;  %700 = vst.msk [vmem:[#allocation2 + $0x40] sm:$0xff] %vm328_vm0, %v683_v39  ;;  %v676_v44 = vadd.f32 %v615_v42, %v346_v36  ;;  %v684_v45 = vadd.f32 %v647_v43, %v354_v37  ;;  %v617_v46 = vpop.f32.mrb[3].mxu0  ;;  %v649_v47 = vpop.f32.mrb[3].mxu1 }
 0x11d   : > { %v351_v47 = vld [vmem:[#allocation2 + $0x30] sm:$0xff] }
 0x11e   : > { %693 = vst.msk [vmem:[#allocation2 + $0x8] sm:$0xff] %vm328_vm0, %v676_v44  ;;  %701 = vst.msk [vmem:[#allocation2 + $0x48] sm:$0xff] %vm328_vm0, %v684_v45 }
 0x121   : > { %v620_v51 = vpop.f32.mrb[4].mxu0  ;;  %v652_v52 = vpop.f32.mrb[4].mxu1 }
 0x122   : > { %v677_v55 = vadd.f32 %v620_v51, %v347_v48  ;;  %v685_v56 = vadd.f32 %v652_v52, %v355_v49  ;;  %v622_v57 = vpop.f32.mrb[5].mxu0  ;;  %v654_v58 = vpop.f32.mrb[5].mxu1  ;;  %v359_v48 = vld [vmem:[#allocation2 + $0x70] sm:$0xff] }
 0x123   : > { %v711_v59 = vld [vmem:[#allocation2] sm:$0xff]  ;;  %v623_v61 = vpop.f32.mrb[6].mxu0  ;;  %v655_v62 = vpop.f32.mrb[6].mxu1  ;;  %v352_v57 = vld [vmem:[#allocation2 + $0x38] sm:$0xff] }
 0x124   : > { %v719_v60 = vld [vmem:[#allocation2 + $0x40] sm:$0xff]  ;;  %v734_v63 = vadd.f32 %v1360_v50, %v711_v59  ;;  %694 = vst.msk [vmem:[#allocation2 + $0x10] sm:$0xff] %vm328_vm0, %v677_v55  ;;  %702 = vst.msk [vmem:[#allocation2 + $0x50] sm:$0xff] %vm328_vm0, %v685_v56  ;;  %v678_v1 = vadd.f32 %v623_v61, %v348_v53  ;;  %v686_v2 = vadd.f32 %v655_v62, %v356_v54  ;;  %v625_v3 = vpop.f32.mrb[7].mxu0  ;;  %v657_v4 = vpop.f32.mrb[7].mxu1 }
 0x125   : > { %v742_v0 = vadd.f32 %v1360_v50, %v719_v60  ;;  %v712_v5 = vld [vmem:[#allocation2 + $0x8] sm:$0xff] }
 0x126   : > { %v720_v6 = vld [vmem:[#allocation2 + $0x48] sm:$0xff]  ;;  %vm750_vm3 = vcmp.ge.f32.partialorder %v734_v63, 0.0  ;;  %v766_v7 = vmul.f32 0.01, %v734_v63  ;;  %695 = vst.msk [vmem:[#allocation2 + $0x18] sm:$0xff] %vm328_vm0, %v678_v1  ;;  %703 = vst.msk [vmem:[#allocation2 + $0x58] sm:$0xff] %vm328_vm0, %v686_v2  ;;  %v735_v9 = vadd.f32 %v1360_v50, %v712_v5 }
 0x127   : > { %vm758_vm4 = vcmp.ge.f32.partialorder %v742_v0, 0.0  ;;  %v774_v8 = vmul.f32 0.01, %v742_v0  ;;  %v743_v10 = vadd.f32 %v1360_v50, %v720_v6 }
 0x128   : > { %v782_v13 = vsel %vm750_vm3, %v734_v63, %v766_v7  ;;  %vm751_vm6 = vcmp.ge.f32.partialorder %v735_v9, 0.0  ;;  %v767_v17 = vmul.f32 0.01, %v735_v9  ;;  %v360_v63 = vld [vmem:[#allocation2 + $0x78] sm:$0xff] }
 0x129   : > { %v790_v14 = vsel %vm758_vm4, %v742_v0, %v774_v8  ;;  %v1089_v15 = vpack.c.bf16 %v782_v13, %v782_v13  ;;  %v628_v18 = vpop.f32.mrb[8].mxu0  ;;  %v660_v19 = vpop.f32.mrb[8].mxu1  ;;  %vm759_vm7 = vcmp.ge.f32.partialorder %v743_v10, 0.0  ;;  %v775_v21 = vmul.f32 0.01, %v743_v10 }
 0x12a   : > { %v1097_v16 = vpack.c.bf16 %v790_v14, %v790_v14  ;;  %v679_v22 = vadd.f32 %v628_v18, %v349_v11  ;;  %v687_v23 = vadd.f32 %v660_v19, %v357_v12  ;;  %v630_v24 = vpop.f32.mrb[9].mxu0  ;;  %v662_v25 = vpop.f32.mrb[9].mxu1  ;;  %v783_v27 = vsel %vm751_vm6, %v735_v9, %v767_v17 }
 0x12b   : > { %863 = vst.msk [vmem:[%s1374_s30] sm:$0xf] %vm862_vm5, %v1089_v15  ;;  %v713_v28 = vld [vmem:[#allocation2 + $0x10] sm:$0xff]  ;;  %v631_v30 = vpop.f32.mrb[10].mxu0  ;;  %v663_v31 = vpop.f32.mrb[10].mxu1  ;;  %v1090_v32 = vpack.c.bf16 %v783_v27, %v783_v27  ;;  %v791_v33 = vsel %vm759_vm7, %v743_v10, %v775_v21 }
 0x12c   : > { %871 = vst.msk [vmem:[%s1374_s30 + $0x20] sm:$0xf] %vm862_vm5, %v1097_v16  ;;  %v721_v29 = vld [vmem:[#allocation2 + $0x50] sm:$0xff]  ;;  %v736_v34 = vadd.f32 %v1360_v50, %v713_v28  ;;  %v633_v36 = vpop.f32.mrb[11].mxu0  ;;  %v665_v37 = vpop.f32.mrb[11].mxu1  ;;  %v1098_v38 = vpack.c.bf16 %v791_v33, %v791_v33  ;;  %v680_v41 = vadd.f32 %v631_v30, %v350_v20  ;;  %v688_v42 = vadd.f32 %v663_v31, %v358_v26 }
 0x12d   : > { %v744_v35 = vadd.f32 %v1360_v50, %v721_v29  ;;  %696 = vst.msk [vmem:[#allocation2 + $0x20] sm:$0xff] %vm328_vm0, %v679_v22  ;;  %704 = vst.msk [vmem:[#allocation2 + $0x60] sm:$0xff] %vm328_vm0, %v687_v23  ;;  %v714_v39 = vld [vmem:[#allocation2 + $0x18] sm:$0xff] }
 0x12e   : > { %v722_v40 = vld [vmem:[#allocation2 + $0x58] sm:$0xff]  ;;  %864 = vst.msk [vmem:[%s1374_s30 + $0x4] sm:$0xf] %vm862_vm5, %v1090_v32  ;;  %vm752_vm8 = vcmp.ge.f32.partialorder %v736_v34, 0.0  ;;  %v768_v43 = vmul.f32 0.01, %v736_v34  ;;  %v737_v45 = vadd.f32 %v1360_v50, %v714_v39 }
 0x12f   : > { %vm760_vm9 = vcmp.ge.f32.partialorder %v744_v35, 0.0  ;;  %v776_v44 = vmul.f32 0.01, %v744_v35  ;;  %872 = vst.msk [vmem:[%s1374_s30 + $0x24] sm:$0xf] %vm862_vm5, %v1098_v38  ;;  %v745_v46 = vadd.f32 %v1360_v50, %v722_v40 }
 0x130   : > { %697 = vst.msk [vmem:[#allocation2 + $0x28] sm:$0xff] %vm328_vm0, %v680_v41  ;;  %705 = vst.msk [vmem:[#allocation2 + $0x68] sm:$0xff] %vm328_vm0, %v688_v42  ;;  %v784_v49 = vsel %vm752_vm8, %v736_v34, %v768_v43  ;;  %vm753_vm10 = vcmp.ge.f32.partialorder %v737_v45, 0.0  ;;  %v769_v54 = vmul.f32 0.01, %v737_v45 }
 0x131   : > { %v792_v51 = vsel %vm760_vm9, %v744_v35, %v776_v44  ;;  %v1091_v52 = vpack.c.bf16 %v784_v49, %v784_v49  ;;  %v636_v55 = vpop.f32.mrb[12].mxu0  ;;  %v668_v56 = vpop.f32.mrb[12].mxu1  ;;  %vm761_vm11 = vcmp.ge.f32.partialorder %v745_v46, 0.0  ;;  %v777_v58 = vmul.f32 0.01, %v745_v46 }
 0x132   : > { %v1099_v53 = vpack.c.bf16 %v792_v51, %v792_v51  ;;  %v681_v59 = vadd.f32 %v636_v55, %v351_v47  ;;  %v689_v60 = vadd.f32 %v668_v56, %v359_v48  ;;  %v638_v61 = vpop.f32.mrb[13].mxu0  ;;  %v670_v62 = vpop.f32.mrb[13].mxu1  ;;  %v785_v0 = vsel %vm753_vm10, %v737_v45, %v769_v54 }
 0x133   : > { %865 = vst.msk [vmem:[%s1374_s30 + $0x8] sm:$0xf] %vm862_vm5, %v1091_v52  ;;  %v639_v3 = vpop.f32.mrb[14].mxu0  ;;  %v671_v4 = vpop.f32.mrb[14].mxu1  ;;  %v1092_v5 = vpack.c.bf16 %v785_v0, %v785_v0  ;;  %v793_v6 = vsel %vm761_vm11, %v745_v46, %v777_v58 }
 0x134   : > { %873 = vst.msk [vmem:[%s1374_s30 + $0x28] sm:$0xf] %vm862_vm5, %v1099_v53  ;;  %v715_v1 = vld [vmem:[#allocation2 + $0x20] sm:$0xff]  ;;  %v641_v9 = vpop.f32.mrb[15].mxu0  ;;  %v673_v10 = vpop.f32.mrb[15].mxu1  ;;  %v1100_v11 = vpack.c.bf16 %v793_v6, %v793_v6  ;;  %v682_v12 = vadd.f32 %v639_v3, %v352_v57  ;;  %v690_v13 = vadd.f32 %v671_v4, %v360_v63 }
 0x135   : > { %v723_v2 = vld [vmem:[#allocation2 + $0x60] sm:$0xff]  ;;  %v738_v7 = vadd.f32 %v1360_v50, %v715_v1  ;;  %698 = vst.msk [vmem:[#allocation2 + $0x30] sm:$0xff] %vm328_vm0, %v681_v59  ;;  %706 = vst.msk [vmem:[#allocation2 + $0x70] sm:$0xff] %vm328_vm0, %v689_v60 }
 0x136   : > { %v746_v8 = vadd.f32 %v1360_v50, %v723_v2  ;;  %866 = vst.msk [vmem:[%s1374_s30 + $0xc] sm:$0xf] %vm862_vm5, %v1092_v5  ;;  %874 = vst.msk [vmem:[%s1374_s30 + $0x2c] sm:$0xf] %vm862_vm5, %v1100_v11 }
 0x137   : > { %vm754_vm12 = vcmp.ge.f32.partialorder %v738_v7, 0.0  ;;  %v770_v14 = vmul.f32 0.01, %v738_v7  ;;  %v716_v16 = vld [vmem:[#allocation2 + $0x28] sm:$0xff]  ;;  %699 = vst.msk [vmem:[#allocation2 + $0x38] sm:$0xff] %vm328_vm0, %v682_v12  ;;  %707 = vst.msk [vmem:[#allocation2 + $0x78] sm:$0xff] %vm328_vm0, %v690_v13 }
 0x138   : > { %vm762_vm13 = vcmp.ge.f32.partialorder %v746_v8, 0.0  ;;  %v778_v15 = vmul.f32 0.01, %v746_v8  ;;  %v724_v17 = vld [vmem:[#allocation2 + $0x68] sm:$0xff]  ;;  %v739_v20 = vadd.f32 %v1360_v50, %v716_v16 }
 0x139   : > { %v786_v18 = vsel %vm754_vm12, %v738_v7, %v770_v14  ;;  %v747_v21 = vadd.f32 %v1360_v50, %v724_v17 }
 0x13a   : > { %v794_v19 = vsel %vm762_vm13, %v746_v8, %v778_v15  ;;  %v1093_v22 = vpack.c.bf16 %v786_v18, %v786_v18  ;;  %vm755_vm14 = vcmp.ge.f32.partialorder %v739_v20, 0.0  ;;  %v771_v24 = vmul.f32 0.01, %v739_v20 }
 0x13b   : > { %v1101_v23 = vpack.c.bf16 %v794_v19, %v794_v19  ;;  %vm763_vm15 = vcmp.ge.f32.partialorder %v747_v21, 0.0  ;;  %v779_v25 = vmul.f32 0.01, %v747_v21 }
 0x13c   : > { %867 = vst.msk [vmem:[%s1374_s30 + $0x10] sm:$0xf] %vm862_vm5, %v1093_v22  ;;  %v717_v26 = vld [vmem:[#allocation2 + $0x30] sm:$0xff]  ;;  %v787_v28 = vsel %vm755_vm14, %v739_v20, %v771_v24 }
 0x13d   : > { %875 = vst.msk [vmem:[%s1374_s30 + $0x30] sm:$0xf] %vm862_vm5, %v1101_v23  ;;  %v725_v27 = vld [vmem:[#allocation2 + $0x70] sm:$0xff]  ;;  %v795_v29 = vsel %vm763_vm15, %v747_v21, %v779_v25  ;;  %v740_v30 = vadd.f32 %v1360_v50, %v717_v26  ;;  %v1094_v32 = vpack.c.bf16 %v787_v28, %v787_v28 }
 0x13e   : > { %v748_v31 = vadd.f32 %v1360_v50, %v725_v27  ;;  %v1102_v33 = vpack.c.bf16 %v795_v29, %v795_v29  ;;  %v718_v36 = vld [vmem:[#allocation2 + $0x38] sm:$0xff] }
 0x13f   : > { %vm756_vm0 = vcmp.ge.f32.partialorder %v740_v30, 0.0  ;;  %v772_v34 = vmul.f32 0.01, %v740_v30  ;;  %868 = vst.msk [vmem:[%s1374_s30 + $0x14] sm:$0xf] %vm862_vm5, %v1094_v32  ;;  %v726_v37 = vld [vmem:[#allocation2 + $0x78] sm:$0xff]  ;;  %v741_v40 = vadd.f32 %v1360_v50, %v718_v36 }
 0x140   : > { %vm764_vm1 = vcmp.ge.f32.partialorder %v748_v31, 0.0  ;;  %v780_v35 = vmul.f32 0.01, %v748_v31  ;;  %876 = vst.msk [vmem:[%s1374_s30 + $0x34] sm:$0xf] %vm862_vm5, %v1102_v33  ;;  %v749_v41 = vadd.f32 %v1360_v50, %v726_v37 }
 0x141   : > { %v788_v38 = vsel %vm756_vm0, %v740_v30, %v772_v34  ;;  %vm757_vm2 = vcmp.ge.f32.partialorder %v741_v40, 0.0  ;;  %v773_v44 = vmul.f32 0.01, %v741_v40 }
 0x142   : > { %v796_v39 = vsel %vm764_vm1, %v748_v31, %v780_v35  ;;  %v1095_v42 = vpack.c.bf16 %v788_v38, %v788_v38  ;;  %vm765_vm3 = vcmp.ge.f32.partialorder %v749_v41, 0.0  ;;  %v781_v45 = vmul.f32 0.01, %v749_v41 }
 0x143   : > { %v1103_v43 = vpack.c.bf16 %v796_v39, %v796_v39  ;;  %v789_v46 = vsel %vm757_vm2, %v741_v40, %v773_v44 }
 0x144   : > { %869 = vst.msk [vmem:[%s1374_s30 + $0x18] sm:$0xf] %vm862_vm5, %v1095_v42  ;;  %v797_v47 = vsel %vm765_vm3, %v749_v41, %v781_v45  ;;  %v1096_v48 = vpack.c.bf16 %v789_v46, %v789_v46 }
 0x145   : > { %877 = vst.msk [vmem:[%s1374_s30 + $0x38] sm:$0xf] %vm862_vm5, %v1103_v43  ;;  %v1104_v49 = vpack.c.bf16 %v797_v47, %v797_v47 }
 0x146   : > { %870 = vst.msk [vmem:[%s1374_s30 + $0x1c] sm:$0xf] %vm862_vm5, %v1096_v48 }
 0x147   : > { %878 = vst.msk [vmem:[%s1374_s30 + $0x3c] sm:$0xf] %vm862_vm5, %v1104_v49 }
 0x148 PF: > { %s13_s14 = sadd.s32 1, %s1217_s14   ;;  %s1441_s12 = smov %s1213_s13 }
 0x149   : > { %p10_p5 = scmp.ge.s32.totalorder %s13_s14, 4   ;;  %s1442_s13 = smov %s1444_s15 }
 0x14b   :  { %12 = sbr.rel (!%p10_p5) target bundleno = 2 (0x2), region = 76 }

// kernel: codis_forward.5
= control target key start
LH: loop header
LB: loop body
LE: loop exit
PB: predicated region body
PF: predicated region fallthrough
CT: control target
= control target key end

     0   :  { %s1092_s12 = smov 0   ;;  %s1094_s13 = smov 0   ;;  %s1243_s0 = inlined_call_operand.vmem [shape: bf16[1,64,400], index: 0, kind: input, shape index: {}]   ;;  %s1244_s1 = inlined_call_operand.vmem [shape: bf16[1,400,32], index: 1, kind: input, shape index: {}]   ;;  %s1245_s2 = inlined_call_operand.vmem [shape: f32[1,1,32], index: 2, kind: input, shape index: {}]   ;;  %s1246_s3 = inlined_call_operand.vmem [shape: bf16[1,64,32], index: 3, kind: output, shape index: {}]  }
   0x1   :  { %s1096_s14 = smov 0  }
   0x2 LB: > { %s35_s15 = sadd.s32 1, %s1064_s13  ;;  %p902_p0 = scmp.ge.s32.totalorder %s1068_s14, 1  ;;  %s1068_s14 = sphi %s1096_s14, %s13_s14   ;;  %s1064_s13 = sphi %s1094_s13, %s1248_s13   ;;  %s1060_s12 = sphi %s1092_s12, %s1247_s12  }
   0x3   : > { %p37_p1 = scmp.ge.s32.totalorder %s35_s15, 2  ;;  %p217_p2 = scmp.lt.s32.totalorder %s1068_s14, 3 }
   0x5   : > { %s1250_s15 = smov (%p37_p1, %s35_s15), 0  ;;  %p218_p3 = pnand %p902_p0, %p217_p2 }
   0x6   : > { %v1009_v0 = vld [vmem:[%s1244_s1 + $0x40] sm:$0xff] (!%p218_p3)   ;;  %v1070_v1 = vmov (!%p218_p3), 0   ;;  %v1012_v4 = vld [vmem:[%s1244_s1 + $0x48] sm:$0xff] (!%p218_p3)   ;;  %v1015_v7 = vld [vmem:[%s1244_s1 + $0x50] sm:$0xff] (!%p218_p3)   ;;  %s903_s7 = sshll.u32 (!%p218_p3), %s1060_s12, 2  ;;  %vm583_vm0 = vcmask (!%p218_p3), 130048  }
   0x7   : > { %221 = sbr.rel (%p218_p3) target bundleno = 285 (0x11d), region = 32  ;;  %639 = vmatprep.subr.bf16.mxu1 (!%p218_p3), %v1070_v1  ;;  %v1010_v2 = vld [vmem:[%s1244_s1 + $0x80] sm:$0xff] (!%p218_p3)   ;;  %955 = vmatprep.subr.bf16.mxu0 (!%p218_p3), %v1009_v0  ;;  %v1013_v5 = vld [vmem:[%s1244_s1 + $0x88] sm:$0xff] (!%p218_p3)   ;;  %v1016_v8 = vld [vmem:[%s1244_s1 + $0x90] sm:$0xff] (!%p218_p3)   ;;  %p279_p4 = scmp.lt.s32.totalorder (!%p218_p3), %s903_s7, 7  ;;  %vm328_vm1 = vcmask (!%p218_p3), 261120  }
   0x8   : > { %v1011_v3 = vld [vmem:[%s1244_s1] sm:$0xff] (!%p218_p3)   ;;  %640 = vmatpush1.bf16.msra.mxu1 (!%p218_p3), %v1010_v2  ;;  %v1014_v6 = vld [vmem:[%s1244_s1 + $0x8] sm:$0xff] (!%p218_p3)   ;;  %v1017_v9 = vld [vmem:[%s1244_s1 + $0x10] sm:$0xff] (!%p218_p3)   ;;  %v1071_v34 = vmov (!%p218_p3), 0.0   ;;  %vm743_vm3 = vcmask (!%p218_p3), 257024  }
   0x9   : > { %956 = vmatpush3.bf16.msra.mxu0 (!%p218_p3), %v1011_v3  ;;  %641 = vmatprep.subr.bf16.mxu1 (!%p218_p3), %v1070_v1  ;;  %v1018_v10 = vld [vmem:[%s1244_s1 + $0x58] sm:$0xff] (!%p218_p3)   ;;  %v1021_v13 = vld [vmem:[%s1244_s1 + $0x60] sm:$0xff] (!%p218_p3)   ;;  %v1024_v16 = vld [vmem:[%s1244_s1 + $0x68] sm:$0xff] (!%p218_p3)   ;;  %329 = vst.msk [vmem:[#allocation2] sm:$0xff] (!%p218_p3), %vm328_vm1, %v1071_v34 }
   0xa   : > { %957 = vmatprep.subr.bf16.mxu0 (!%p218_p3), %v1012_v4  ;;  %v1019_v11 = vld [vmem:[%s1244_s1 + $0x98] sm:$0xff] (!%p218_p3)   ;;  %v1022_v14 = vld [vmem:[%s1244_s1 + $0xa0] sm:$0xff] (!%p218_p3)   ;;  %v1025_v17 = vld [vmem:[%s1244_s1 + $0xa8] sm:$0xff] (!%p218_p3)   ;;  %330 = vst.msk [vmem:[#allocation2 + $0x8] sm:$0xff] (!%p218_p3), %vm328_vm1, %v1071_v34 }
   0xb   : > { %v1020_v12 = vld [vmem:[%s1244_s1 + $0x18] sm:$0xff] (!%p218_p3)   ;;  %v1023_v15 = vld [vmem:[%s1244_s1 + $0x20] sm:$0xff] (!%p218_p3)   ;;  %v1026_v18 = vld [vmem:[%s1244_s1 + $0x28] sm:$0xff] (!%p218_p3)   ;;  %331 = vst.msk [vmem:[#allocation2 + $0x10] sm:$0xff] (!%p218_p3), %vm328_vm1, %v1071_v34 }
   0xc   : > { %642 = vmatpush1.bf16.msra.mxu1 (!%p218_p3), %v1013_v5  ;;  %v1027_v19 = vld [vmem:[%s1244_s1 + $0x70] sm:$0xff] (!%p218_p3)   ;;  %v1030_v22 = vld [vmem:[%s1244_s1 + $0x78] sm:$0xff] (!%p218_p3)   ;;  %v1036_v28 = vld [vmem:[%s1244_s1 + $0xc0] sm:$0xff] (!%p218_p3)   ;;  %332 = vst.msk [vmem:[#allocation2 + $0x18] sm:$0xff] (!%p218_p3), %vm328_vm1, %v1071_v34 }
   0xd   : > { %958 = vmatpush3.bf16.msra.mxu0 (!%p218_p3), %v1014_v6  ;;  %643 = vmatprep.subr.bf16.mxu1 (!%p218_p3), %v1070_v1  ;;  %v1028_v20 = vld [vmem:[%s1244_s1 + $0xb0] sm:$0xff] (!%p218_p3)   ;;  %v1031_v24 = vld [vmem:[%s1244_s1 + $0xb8] sm:$0xff] (!%p218_p3)   ;;  %v943_v61 = vld [vmem:[%s1245_s2] ss:$0 sm:$0xff] (!%p218_p3) }
   0xe   : > { %959 = vmatprep.subr.bf16.mxu0 %v1015_v7  ;;  %s1252_s7 = smov (!%p279_p4, %s903_s7), 7  ;;  %v1029_v21 = vld [vmem:[%s1244_s1 + $0x30] sm:$0xff]   ;;  %v1032_v26 = vld [vmem:[%s1244_s1 + $0x38] sm:$0xff]  }
   0xf   : > { %s950_s27 = sshll.u32 %s1252_s7, 4  ;;  %s907_s26 = sshll.u32 %s1252_s7, 2 }
  0x10   : > { %644 = vmatpush1.bf16.msra.mxu1 %v1016_v8  ;;  %s1185_s10 = scalar_lea.vmem %s1243_s0, %s950_s27  ;;  %v333_v40 = vld [vmem:[#allocation2] sm:$0xff]  ;;  %s321_s29 = scalar_lea.vmem %s1246_s3, %s907_s26 }
  0x11   : > { %960 = vmatpush3.bf16.msra.mxu0 %v1017_v9  ;;  %645 = vmatprep.subr.bf16.mxu1 %v1070_v1  ;;  %v1035_v23 = vld [vmem:[%s1185_s10 + $0x4] ss:$16 sps:$4 sm:$0xff]   ;;  %v1039_v25 = vld [vmem:[%s1185_s10 + $0xc] ss:$16 sps:$4 sm:$0xff]   ;;  %v1033_v27 = vld [vmem:[%s1185_s10] ss:$16 sps:$4 sm:$0xff]  }
  0x12   : > { %961 = vmatprep.subr.bf16.mxu0 %v1018_v10  ;;  %622 = vmatprep.mubr.bf16.mxu0 %v1035_v23  ;;  %v1040_v29 = vld [vmem:[%s1185_s10 + $0x24] ss:$16 sps:$4 sm:$0xff]   ;;  %v1037_v30 = vld [vmem:[%s1185_s10 + $0x8] ss:$16 sps:$4 sm:$0xff]   ;;  %v1043_v31 = vld [vmem:[%s1185_s10 + $0x2c] ss:$16 sps:$4 sm:$0xff]  }
  0x13   : > { %941 = vmatprep.mubr.msk.bf16.mxu1 %vm583_vm0, %v1039_v25  ;;  %v1042_v32 = vld [vmem:[%s1185_s10 + $0x20] ss:$16 sps:$4 sm:$0xff]   ;;  %v1045_v33 = vld [vmem:[%s1185_s10 + $0x28] ss:$16 sps:$4 sm:$0xff]  }
  0x14   : > { %646 = vmatpush1.bf16.msra.mxu1 %v1019_v11  ;;  %v334_v45 = vld [vmem:[#allocation2 + $0x8] sm:$0xff]  ;;  %v335_v56 = vld [vmem:[#allocation2 + $0x10] sm:$0xff]  ;;  %v336_v62 = vld [vmem:[#allocation2 + $0x18] sm:$0xff] }
  0x15   : > { %962 = vmatpush3.bf16.msra.mxu0 %v1020_v12  ;;  %647 = vmatprep.subr.bf16.mxu1 %v1070_v1 }
  0x16   : > { %963 = vmatprep.subr.bf16.mxu0 %v1021_v13 }
  0x18   : > { %648 = vmatpush1.bf16.msra.mxu1 %v1022_v14 }
  0x19   : > { %964 = vmatpush3.bf16.msra.mxu0 %v1023_v15  ;;  %649 = vmatprep.subr.bf16.mxu1 %v1070_v1 }
  0x1a   : > { %965 = vmatprep.subr.bf16.mxu0 %v1024_v16 }
  0x1c   : > { %650 = vmatpush1.bf16.msra.mxu1 %v1025_v17 }
  0x1d   : > { %966 = vmatpush3.bf16.msra.mxu0 %v1026_v18  ;;  %651 = vmatprep.subr.bf16.mxu1 %v1070_v1 }
  0x1e   : > { %967 = vmatprep.subr.bf16.mxu0 %v1027_v19 }
  0x20   : > { %652 = vmatpush1.bf16.msra.mxu1 %v1028_v20 }
  0x21   : > { %968 = vmatpush3.bf16.msra.mxu0 %v1029_v21  ;;  %653 = vmatprep.subr.bf16.mxu1 %v1070_v1 }
  0x22   : > { %969 = vmatprep.subr.bf16.mxu0 %v1030_v22 }
  0x24   : > { %654 = vmatpush1.bf16.msra.mxu1 %v1031_v24 }
  0x25   : > { %970 = vmatpush3.bf16.msra.mxu0 %v1032_v26  ;;  %655 = vmatprep.subr.bf16.mxu1 %v1070_v1 }
  0x28   : > { %623 = vmatmul.mubr.bf16.vlgmr.msra.gmra.mrb[0].mxu0 %v1033_v27  ;;  %656 = vmatpush1.bf16.msra.mxu1 %v1036_v28 }
  0x29   : > { %630 = vmatprep.mubr.bf16.mxu0 %v1040_v29 }
  0x2b   : > { %672 = vmatmul.mubr.bf16.vlgmr.msra.gmra.mrb[0].mxu1 %v1037_v30 }
  0x2c   : > { %942 = vmatprep.mubr.msk.bf16.mxu1 %vm583_vm0, %v1043_v31 }
  0x30   : > { %631 = vmatmul.mubr.bf16.gmra.mrb[4].mxu0 %v1042_v32 }
  0x33   : > { %680 = vmatmul.mubr.bf16.gmra.mrb[4].mxu1 %v1045_v33 }
  0xfb   : > { %v971_v35 = vpop.f32.mrb[0].mxu0 }
  0xfc   : > { %v972_v36 = vpop.f32.mrb[1].mxu0 }
  0xfd   : > { %v973_v37 = vadd.f32 %v972_v36, %v971_v35  ;;  %v974_v38 = vpop.f32.mrb[2].mxu0 }
  0xfe   : > { %v975_v39 = vpop.f32.mrb[3].mxu0  ;;  %v673_v41 = vpop.f32.mrb[0].mxu1 }
  0xff   : > { %v976_v42 = vadd.f32 %v975_v39, %v974_v38  ;;  %v674_v43 = vadd.f32 %v973_v37, %v673_v41  ;;  %v675_v44 = vpop.f32.mrb[1].mxu1 }
 0x100   : > { %v676_v46 = vpop.f32.mrb[2].mxu1 }
 0x101   : > { %v688_v47 = vadd.f32 %v674_v43, %v333_v40  ;;  %v677_v48 = vadd.f32 %v976_v42, %v676_v46  ;;  %v678_v49 = vpop.f32.mrb[3].mxu1 }
 0x103   : > { %693 = vst.msk [vmem:[#allocation2] sm:$0xff] %vm328_vm1, %v688_v47  ;;  %v689_v50 = vadd.f32 %v677_v48, %v334_v45  ;;  %v977_v51 = vpop.f32.mrb[4].mxu0 }
 0x104   : > { %v978_v52 = vpop.f32.mrb[5].mxu0 }
 0x105   : > { %694 = vst.msk [vmem:[#allocation2 + $0x8] sm:$0xff] %vm328_vm1, %v689_v50  ;;  %v979_v53 = vadd.f32 %v978_v52, %v977_v51  ;;  %v980_v54 = vpop.f32.mrb[6].mxu0 }
 0x106   : > { %v981_v55 = vpop.f32.mrb[7].mxu0  ;;  %v681_v57 = vpop.f32.mrb[4].mxu1 }
 0x107   : > { %v982_v58 = vadd.f32 %v981_v55, %v980_v54  ;;  %v682_v59 = vadd.f32 %v979_v53, %v681_v57  ;;  %v683_v60 = vpop.f32.mrb[5].mxu1 }
 0x108   : > { %v684_v63 = vpop.f32.mrb[6].mxu1 }
 0x109   : > { %v690_v0 = vadd.f32 %v682_v59, %v335_v56  ;;  %v685_v1 = vadd.f32 %v982_v58, %v684_v63  ;;  %v686_v2 = vpop.f32.mrb[7].mxu1 }
 0x10a   : > { %v700_v3 = vld [vmem:[#allocation2] sm:$0xff] }
 0x10b   : > { %v711_v4 = vadd.f32 %v943_v61, %v700_v3  ;;  %695 = vst.msk [vmem:[#allocation2 + $0x10] sm:$0xff] %vm328_vm1, %v690_v0  ;;  %v691_v5 = vadd.f32 %v685_v1, %v336_v62 }
 0x10c   : > { %v701_v6 = vld [vmem:[#allocation2 + $0x8] sm:$0xff] }
 0x10d   : > { %vm715_vm2 = vcmp.ge.f32.partialorder %v711_v4, 0.0  ;;  %v719_v7 = vmul.f32 0.01, %v711_v4  ;;  %v712_v8 = vadd.f32 %v943_v61, %v701_v6  ;;  %696 = vst.msk [vmem:[#allocation2 + $0x18] sm:$0xff] %vm328_vm1, %v691_v5 }
 0x10f   : > { %v723_v9 = vsel %vm715_vm2, %v711_v4, %v719_v7  ;;  %vm716_vm4 = vcmp.ge.f32.partialorder %v712_v8, 0.0  ;;  %v720_v10 = vmul.f32 0.01, %v712_v8 }
 0x110   : > { %v951_v11 = vpack.c.bf16 %v723_v9, %v723_v9 }
 0x111   : > { %v724_v12 = vsel %vm716_vm4, %v712_v8, %v720_v10 }
 0x112   : > { %744 = vst.msk [vmem:[%s321_s29] sm:$0xf] %vm743_vm3, %v951_v11  ;;  %v952_v13 = vpack.c.bf16 %v724_v12, %v724_v12  ;;  %v702_v14 = vld [vmem:[#allocation2 + $0x10] sm:$0xff] }
 0x113   : > { %v713_v15 = vadd.f32 %v943_v61, %v702_v14 }
 0x114   : > { %745 = vst.msk [vmem:[%s321_s29 + $0x4] sm:$0xf] %vm743_vm3, %v952_v13  ;;  %v703_v16 = vld [vmem:[#allocation2 + $0x18] sm:$0xff] }
 0x115   : > { %vm717_vm5 = vcmp.ge.f32.partialorder %v713_v15, 0.0  ;;  %v721_v17 = vmul.f32 0.01, %v713_v15  ;;  %v714_v18 = vadd.f32 %v943_v61, %v703_v16 }
 0x117   : > { %v725_v19 = vsel %vm717_vm5, %v713_v15, %v721_v17  ;;  %vm718_vm6 = vcmp.ge.f32.partialorder %v714_v18, 0.0  ;;  %v722_v20 = vmul.f32 0.01, %v714_v18 }
 0x118   : > { %v953_v21 = vpack.c.bf16 %v725_v19, %v725_v19 }
 0x119   : > { %v726_v22 = vsel %vm718_vm6, %v714_v18, %v722_v20 }
 0x11a   : > { %746 = vst.msk [vmem:[%s321_s29 + $0x8] sm:$0xf] %vm743_vm3, %v953_v21  ;;  %v954_v23 = vpack.c.bf16 %v726_v22, %v726_v22 }
 0x11c   : > { %747 = vst.msk [vmem:[%s321_s29 + $0xc] sm:$0xf] %vm743_vm3, %v954_v23 }
 0x11d PF: > { %s13_s14 = sadd.s32 1, %s1068_s14   ;;  %s1247_s12 = smov %s1064_s13 }
 0x11e   : > { %p10_p5 = scmp.ge.s32.totalorder %s13_s14, 4   ;;  %s1248_s13 = smov %s1250_s15 }
 0x120   :  { %12 = sbr.rel (!%p10_p5) target bundleno = 2 (0x2), region = 76 }

</bundles_post_ra>
